<compile_context>
chip_gen: v7x
topology: tpu7x:2x2x1
jax: 0.10.0
libtpu: 0.0.40
codegen_flags: <defaults>
</compile_context>

<pallas_src>
import functools

import jax
import jax.numpy as jnp
from jax.experimental import pallas as pl
from jax.experimental.pallas import tpu as pltpu

IN_FEATURES = 784
HIDDEN = 100
OUT = 10
HIDDEN_PAD = 128   # 100 -> 128: lane-aligned MXU N (matmul 1) / K (matmul 2)
OUT_PAD = 128      # 10  -> 128: lane-dense output stores (no vst.msk)


def _round_up(n, m):
    return ((n + m - 1) // m) * m


def _choose_batch_tile(B, tb_cap):
    """Batch-tile rows: multiple of 128 (bf16 sublane pack), prefer 256-granule
    tiles with >= 2 tiles (v7x megacore) once the batch is big enough, capped
    so the double-buffered f32 x tile stays well inside v7x's 64 MiB VMEM."""
    b128 = _round_up(B, 128)
    if b128 <= 256:
        return b128                       # tiny batch: one tile
    tb = _round_up(pl.cdiv(b128, 2), 256)  # >= 2 balanced tiles, 256-aligned
    return min(tb, tb_cap)


def simplenet_kernel(x_ref, w1_ref, b1_ref, w2_ref, b2_ref, o_ref):
    # x arrives as f32 straight from HBM (single pass); cast the tile to bf16
    # here (VPU is idle) so matmul 1 runs on the bf16 MXU fast path, f32 acc.
    xb = x_ref[...].astype(jnp.bfloat16)
    h = jnp.dot(xb, w1_ref[...], preferred_element_type=jnp.float32)
    h = jnp.maximum(h + b1_ref[...], 0.0)            # bias + ReLU in f32 (VPU)
    # Second matmul is tiny (K=N=128): keep it fully f32 for tighter logits.
    y = jnp.dot(h, w2_ref[...], preferred_element_type=jnp.float32)
    o_ref[...] = (y + b2_ref[...]).astype(o_ref.dtype)   # bf16 lane-dense store


def prepare_params(w1, b1, w2, b2):
    """One-time parameter glue, hoisted out of the per-call hot path.

    PyTorch layouts: w1 [100,784], b1 [100], w2 [10,100], b2 [10].
    Returns weights pre-transposed to [in, out] and zero-padded to lane-aligned
    sizes (hidden 100->128, out 10->128).  w1 is bf16 (MXU operand); the tiny
    w2 and both biases stay f32.
    """
    w1_t = jnp.zeros((IN_FEATURES, HIDDEN_PAD), jnp.bfloat16)
    w1_t = w1_t.at[:, :HIDDEN].set(w1.T.astype(jnp.bfloat16))
    b1_p = jnp.zeros((1, HIDDEN_PAD), jnp.float32)
    b1_p = b1_p.at[:, :HIDDEN].set(b1.astype(jnp.float32))
    w2_t = jnp.zeros((HIDDEN_PAD, OUT_PAD), jnp.float32)
    w2_t = w2_t.at[:HIDDEN, :OUT].set(w2.T.astype(jnp.float32))
    b2_p = jnp.zeros((1, OUT_PAD), jnp.float32)
    b2_p = b2_p.at[:, :OUT].set(b2.astype(jnp.float32))
    return w1_t, b1_p, w2_t, b2_p


@functools.partial(jax.jit, static_argnames=("tb_cap",))
def simplenet_forward(x, w1_t, b1_p, w2_t, b2_p, *, tb_cap=1024):
    """x: [B, 784] f32. Returns [B, 10] f32 logits."""
    B = x.shape[0]
    tb = _choose_batch_tile(B, tb_cap)
    n_tiles = pl.cdiv(B, tb)
    b_pad = n_tiles * tb                  # output rows (ragged x tile is clamped)

    flops = 2 * b_pad * (IN_FEATURES * HIDDEN_PAD + HIDDEN_PAD * OUT_PAD)
    bytes_accessed = (
        b_pad * IN_FEATURES * 4            # x read (f32, single pass)
        + b_pad * OUT_PAD * 2              # bf16 output writeback
        + IN_FEATURES * HIDDEN_PAD * 2     # w1 (bf16, resident)
        + HIDDEN_PAD * OUT_PAD * 4         # w2 (f32, resident)
        + (HIDDEN_PAD + OUT_PAD) * 4       # biases
    )

    out = pl.pallas_call(
        simplenet_kernel,
        out_shape=jax.ShapeDtypeStruct((b_pad, OUT_PAD), jnp.bfloat16),
        grid_spec=pltpu.PrefetchScalarGridSpec(
            num_scalar_prefetch=0,
            grid=(n_tiles,),
            in_specs=[
                pl.BlockSpec((tb, IN_FEATURES), lambda i: (i, 0)),          # x tile
                pl.BlockSpec((IN_FEATURES, HIDDEN_PAD), lambda i: (0, 0)),  # w1 (resident)
                pl.BlockSpec((1, HIDDEN_PAD), lambda i: (0, 0)),            # b1 (resident)
                pl.BlockSpec((HIDDEN_PAD, OUT_PAD), lambda i: (0, 0)),      # w2 (resident)
                pl.BlockSpec((1, OUT_PAD), lambda i: (0, 0)),               # b2 (resident)
            ],
            out_specs=pl.BlockSpec((tb, OUT_PAD), lambda i: (i, 0)),
        ),
        compiler_params=pltpu.CompilerParams(
            # Batch tiles are independent -> shard across v7x's 2 TensorCores.
            dimension_semantics=("parallel",),
            # <= ~48 MiB keeps headroom under v7x's 64 MiB physical VMEM;
            # comfortably inside v5e/v6e's 128 MiB.
            vmem_limit_bytes=48 * 1024 * 1024,
        ),
        cost_estimate=pl.CostEstimate(
            flops=flops, transcendentals=0, bytes_accessed=bytes_accessed),
    )(x, w1_t, b1_p, w2_t, b2_p)

    # Strip batch padding + the 10->128 lane padding; upcast bf16 -> f32.
    return out[:B, :OUT].astype(jnp.float32)


if __name__ == "__main__":
    key = jax.random.PRNGKey(0)
    kx, kw1, kb1, kw2, kb2 = jax.random.split(key, 5)

    # Not a multiple of the tile: exercises the clamped ragged last tile and
    # the 2-tile (v7x megacore) split (tb=256, n_tiles=2).
    B = 500
    x = jax.random.normal(kx, (B, IN_FEATURES), dtype=jnp.float32)

    # Deterministic parameter init (PyTorch Linear shapes: [out, in]).
    bound1 = 1.0 / (IN_FEATURES ** 0.5)
    w1 = jax.random.uniform(kw1, (HIDDEN, IN_FEATURES), jnp.float32, -bound1, bound1)
    b1 = jax.random.uniform(kb1, (HIDDEN,), jnp.float32, -bound1, bound1)
    bound2 = 1.0 / (HIDDEN ** 0.5)
    w2 = jax.random.uniform(kw2, (OUT, HIDDEN), jnp.float32, -bound2, bound2)
    b2 = jax.random.uniform(kb2, (OUT,), jnp.float32, -bound2, bound2)

    params = prepare_params(w1, b1, w2, b2)       # one-time, off the hot path
    y = simplenet_forward(x, *params)
    jax.block_until_ready(y)

    # f32 reference; kernel uses bf16 MXU operands for matmul 1 + bf16 output,
    # so tolerance is loosened accordingly.
    h_ref = jnp.maximum(x @ w1.T + b1, 0.0)
    y_ref = h_ref @ w2.T + b2
    assert y.shape == (B, OUT), y.shape
    max_err = jnp.max(jnp.abs(y - y_ref))
    assert jnp.allclose(y, y_ref, atol=2e-2, rtol=2e-2), (
        f"mismatch vs reference, max abs err = {max_err}")

    print("KERNEL_OK")
</pallas_src>

<mosaic_0001>
module attributes {stable_mosaic.version = 11 : i64} {
  func.func @simplenet_kernel(%arg0: i32, %arg1: memref<256x784xf32, #tpu.memory_space<vmem>>, %arg2: memref<784x128xbf16, #tpu.memory_space<vmem>>, %arg3: memref<1x128xf32, #tpu.memory_space<vmem>>, %arg4: memref<128x128xf32, #tpu.memory_space<vmem>>, %arg5: memref<1x128xf32, #tpu.memory_space<vmem>>, %arg6: memref<256x128xbf16, #tpu.memory_space<vmem>>) attributes {dimension_semantics = [#tpu.dimension_semantics<parallel>], iteration_bounds = array<i64: 2>, scalar_prefetch = 0 : i64, scratch_operands = 0 : i64, tpu.core_type = #tpu.core_type<tc>, window_params = [{transform_indices = @transform_0, window_bounds = array<i64: 256, 784>}, {pipeline_mode = #tpu.pipeline_mode<synchronous>, transform_indices = @transform_1, window_bounds = array<i64: 784, 128>}, {pipeline_mode = #tpu.pipeline_mode<synchronous>, transform_indices = @transform_2, window_bounds = array<i64: 1, 128>}, {pipeline_mode = #tpu.pipeline_mode<synchronous>, transform_indices = @transform_3, window_bounds = array<i64: 128, 128>}, {pipeline_mode = #tpu.pipeline_mode<synchronous>, transform_indices = @transform_4, window_bounds = array<i64: 1, 128>}, {transform_indices = @transform_5, window_bounds = array<i64: 256, 128>}]} {
    %c0 = arith.constant 0 : index
    %c0_0 = arith.constant 0 : index
    %0 = vector.load %arg1[%c0, %c0_0] : memref<256x784xf32, #tpu.memory_space<vmem>>, vector<256x784xf32>
    %1 = arith.truncf %0 : vector<256x784xf32> to vector<256x784xbf16>
    %c0_1 = arith.constant 0 : index
    %c0_2 = arith.constant 0 : index
    %2 = vector.load %arg2[%c0_1, %c0_2] : memref<784x128xbf16, #tpu.memory_space<vmem>>, vector<784x128xbf16>
    %cst = arith.constant dense<0.000000e+00> : vector<256x128xf32>
    %3 = tpu.matmul %1, %2, %cst {dimension_numbers = #tpu.dot_dimension_numbers<[1], [0], [0], [1], [0, 0, 1, 1], [], []>} : vector<256x784xbf16>, vector<784x128xbf16>, vector<256x128xf32> -> vector<256x128xf32>
    %c0_3 = arith.constant 0 : index
    %c0_4 = arith.constant 0 : index
    %4 = vector.load %arg3[%c0_3, %c0_4] : memref<1x128xf32, #tpu.memory_space<vmem>>, vector<1x128xf32>
    %5 = vector.broadcast %4 : vector<1x128xf32> to vector<256x128xf32>
    %6 = arith.addf %3, %5 : vector<256x128xf32>
    %cst_5 = arith.constant 0.000000e+00 : f32
    %7 = vector.broadcast %cst_5 : f32 to vector<256x128xf32>
    %8 = arith.maximumf %6, %7 : vector<256x128xf32>
    %c0_6 = arith.constant 0 : index
    %c0_7 = arith.constant 0 : index
    %9 = vector.load %arg4[%c0_6, %c0_7] : memref<128x128xf32, #tpu.memory_space<vmem>>, vector<128x128xf32>
    %cst_8 = arith.constant dense<0.000000e+00> : vector<256x128xf32>
    %10 = tpu.matmul %8, %9, %cst_8 {dimension_numbers = #tpu.dot_dimension_numbers<[1], [0], [0], [1], [0, 0, 1, 1], [], []>} : vector<256x128xf32>, vector<128x128xf32>, vector<256x128xf32> -> vector<256x128xf32>
    %c0_9 = arith.constant 0 : index
    %c0_10 = arith.constant 0 : index
    %11 = vector.load %arg5[%c0_9, %c0_10] : memref<1x128xf32, #tpu.memory_space<vmem>>, vector<1x128xf32>
    %12 = vector.broadcast %11 : vector<1x128xf32> to vector<256x128xf32>
    %13 = arith.addf %10, %12 : vector<256x128xf32>
    %14 = arith.truncf %13 : vector<256x128xf32> to vector<256x128xbf16>
    %c0_11 = arith.constant 0 : index
    %c0_12 = arith.constant 0 : index
    %15 = vector.load %arg6[%c0_11, %c0_12] : memref<256x128xbf16, #tpu.memory_space<vmem>>, vector<256x128xbf16>
    tpu.vector_store %arg6[%c0_11, %c0_12], %14 {strides = array<i32>} : memref<256x128xbf16, #tpu.memory_space<vmem>>, vector<256x128xbf16>,
    return
  }
  func.func @transform_0(%arg0: i32) -> (i32, i32) {
    %c0_i32 = arith.constant 0 : i32
    %c0_i32_0 = arith.constant 0 : i32
    return %arg0, %c0_i32 : i32, i32
  }
  func.func @transform_1(%arg0: i32) -> (i32, i32) {
    %c0_i32 = arith.constant 0 : i32
    %c0_i32_0 = arith.constant 0 : i32
    %c0_i32_1 = arith.constant 0 : i32
    return %c0_i32, %c0_i32_0 : i32, i32
  }
  func.func @transform_2(%arg0: i32) -> (i32, i32) {
    %c0_i32 = arith.constant 0 : i32
    %c0_i32_0 = arith.constant 0 : i32
    %c0_i32_1 = arith.constant 0 : i32
    return %c0_i32, %c0_i32_0 : i32, i32
  }
  func.func @transform_3(%arg0: i32) -> (i32, i32) {
    %c0_i32 = arith.constant 0 : i32
    %c0_i32_0 = arith.constant 0 : i32
    %c0_i32_1 = arith.constant 0 : i32
    return %c0_i32, %c0_i32_0 : i32, i32
  }
  func.func @transform_4(%arg0: i32) -> (i32, i32) {
    %c0_i32 = arith.constant 0 : i32
    %c0_i32_0 = arith.constant 0 : i32
    %c0_i32_1 = arith.constant 0 : i32
    return %c0_i32, %c0_i32_0 : i32, i32
  }
  func.func @transform_5(%arg0: i32) -> (i32, i32) {
    %c0_i32 = arith.constant 0 : i32
    %c0_i32_0 = arith.constant 0 : i32
    return %arg0, %c0_i32 : i32, i32
  }
}

</mosaic_0001>

<bundles_post_ra>
// kernel: simplenet_forward.1
= control target key start
LH: loop header
LB: loop body
LE: loop exit
PB: predicated region body
PF: predicated region fallthrough
CT: control target
= control target key end

     0   :  { %s3061_s18 = smov 0   ;;  %s3765_s0 = inlined_call_operand.vmem [shape: f32[500,784], index: 0, kind: input, shape index: {}]   ;;  %s3766_s1 = inlined_call_operand.vmem [shape: bf16[784,128], index: 1, kind: input, shape index: {}]   ;;  %s3767_s2 = inlined_call_operand.vmem [shape: f32[1,128], index: 2, kind: input, shape index: {}]   ;;  %s3768_s3 = inlined_call_operand.vmem [shape: f32[128,128], index: 3, kind: input, shape index: {}]   ;;  %s3769_s4 = inlined_call_operand.vmem [shape: f32[1,128], index: 4, kind: input, shape index: {}]   ;;  %s3770_s5 = inlined_call_operand.vmem [shape: bf16[512,128], index: 5, kind: output, shape index: {}]  }
   0x1 LB: > { %s2181_s19 = sadd.s32 4294967295, %s3029_s18   ;;  %p2185_p0 = scmp.ge.s32.totalorder %s3029_s18, 1  ;;  %s3029_s18 = sphi %s3061_s18, %s15_s18  }
   0x2   : > { %p199_p1 = scmp.lt.s32.totalorder %s3029_s18, 3 }
   0x4   : > { %p200_p2 = pnand %p2185_p0, %p199_p1 }
   0x5   : > { %v2974_v0 = vld [vmem:[%s3766_s1 + $0x40] sm:$0xff] (!%p200_p2)   ;;  %v2978_v4 = vld [vmem:[%s3766_s1 + $0x48] sm:$0xff] (!%p200_p2)   ;;  %v2982_v8 = vld [vmem:[%s3766_s1 + $0x50] sm:$0xff] (!%p200_p2)   ;;  %s3113_s25 = sshll.u32 (!%p200_p2), %s2181_s19, 5  ;;  %vm992_vm0 = vcmask (!%p200_p2), 130048  }
   0x6   : > { %203 = sbr.rel (%p200_p2) target bundleno = 727 (0x2d7), region = 40  ;;  %v2975_v1 = vld [vmem:[%s3766_s1] sm:$0xff] (!%p200_p2)   ;;  %2418 = vmatprep.subr.bf16.mxu0 (!%p200_p2), %v2974_v0  ;;  %v2979_v5 = vld [vmem:[%s3766_s1 + $0x8] sm:$0xff] (!%p200_p2)   ;;  %v2983_v9 = vld [vmem:[%s3766_s1 + $0x10] sm:$0xff] (!%p200_p2)   ;;  %p239_p3 = scmp.lt.s32.totalorder (!%p200_p2), %s3113_s25, 62 }
   0x7   : > { %v2976_v2 = vld [vmem:[%s3766_s1 + $0xc0] sm:$0xff] (!%p200_p2)   ;;  %2419 = vmatpush3.bf16.msra.mxu0 (!%p200_p2), %v2975_v1  ;;  %v2980_v6 = vld [vmem:[%s3766_s1 + $0xc8] sm:$0xff] (!%p200_p2)   ;;  %v2984_v10 = vld [vmem:[%s3766_s1 + $0xd0] sm:$0xff] (!%p200_p2)   ;;  %p251_p4 = scmp.lt.s32.totalorder (!%p200_p2), %s3113_s25, 63 }
   0x8   : > { %v2977_v3 = vld [vmem:[%s3766_s1 + $0x80] sm:$0xff] (!%p200_p2)   ;;  %2530 = vmatprep.subr.bf16.mxu1 (!%p200_p2), %v2976_v2  ;;  %2420 = vmatprep.subr.bf16.mxu0 (!%p200_p2), %v2978_v4  ;;  %v2981_v7 = vld [vmem:[%s3766_s1 + $0x88] sm:$0xff] (!%p200_p2)   ;;  %v2985_v11 = vld [vmem:[%s3766_s1 + $0x90] sm:$0xff] (!%p200_p2)  }
   0x9   : > { %2531 = vmatpush3.bf16.msra.mxu1 (!%p200_p2), %v2977_v3  ;;  %v2986_v12 = vld [vmem:[%s3766_s1 + $0x58] sm:$0xff] (!%p200_p2)   ;;  %v2990_v16 = vld [vmem:[%s3766_s1 + $0x60] sm:$0xff] (!%p200_p2)   ;;  %v2994_v20 = vld [vmem:[%s3766_s1 + $0x68] sm:$0xff] (!%p200_p2)  }
   0xa   : > { %2532 = vmatprep.subr.bf16.mxu1 (!%p200_p2), %v2980_v6  ;;  %v2987_v13 = vld [vmem:[%s3766_s1 + $0x18] sm:$0xff] (!%p200_p2)   ;;  %v2991_v17 = vld [vmem:[%s3766_s1 + $0x20] sm:$0xff] (!%p200_p2)   ;;  %v2995_v21 = vld [vmem:[%s3766_s1 + $0x28] sm:$0xff] (!%p200_p2)  }
   0xb   : > { %2421 = vmatpush3.bf16.msra.mxu0 (!%p200_p2), %v2979_v5  ;;  %v2988_v14 = vld [vmem:[%s3766_s1 + $0xd8] sm:$0xff] (!%p200_p2)   ;;  %v2992_v18 = vld [vmem:[%s3766_s1 + $0xe0] sm:$0xff] (!%p200_p2)   ;;  %v2996_v22 = vld [vmem:[%s3766_s1 + $0xe8] sm:$0xff] (!%p200_p2)  }
   0xc   : > { %2422 = vmatprep.subr.bf16.mxu0 (!%p200_p2), %v2982_v8  ;;  %v2989_v15 = vld [vmem:[%s3766_s1 + $0x98] sm:$0xff] (!%p200_p2)   ;;  %v2993_v19 = vld [vmem:[%s3766_s1 + $0xa0] sm:$0xff] (!%p200_p2)   ;;  %v2997_v23 = vld [vmem:[%s3766_s1 + $0xa8] sm:$0xff] (!%p200_p2)  }
   0xd   : > { %2533 = vmatpush3.bf16.msra.mxu1 %v2981_v7  ;;  %s240_s14 = scalar_select %p239_p3, %s3113_s25, 62  ;;  %v2998_v24 = vld [vmem:[%s3766_s1 + $0x70] sm:$0xff]   ;;  %v3002_v28 = vld [vmem:[%s3766_s1 + $0x78] sm:$0xff]   ;;  %v3006_v38 = vld [vmem:[%s3766_s1 + $0x140] sm:$0xff]  }
   0xe   : > { %2534 = vmatprep.subr.bf16.mxu1 %v2984_v10  ;;  %v2999_v25 = vld [vmem:[%s3766_s1 + $0x30] sm:$0xff]   ;;  %v3003_v29 = vld [vmem:[%s3766_s1 + $0x38] sm:$0xff]   ;;  %v3007_v42 = vld [vmem:[%s3766_s1 + $0x100] sm:$0xff]   ;;  %s3772_s25 = smov (!%p251_p4, %s3113_s25), 63 }
   0xf   : > { %2423 = vmatpush3.bf16.msra.mxu0 %v2983_v9  ;;  %s2965_s26 = smul.u32 56, %s240_s14  ;;  %v3000_v26 = vld [vmem:[%s3766_s1 + $0xf0] sm:$0xff]   ;;  %v3004_v30 = vld [vmem:[%s3766_s1 + $0xf8] sm:$0xff]   ;;  %v3008_v60 = vld [vmem:[%s3766_s1 + $0x148] sm:$0xff]   ;;  %s2189_s23 = sshll.u32 %s3772_s25, 2 }
  0x10   : > { %2424 = vmatprep.subr.bf16.mxu0 %v2986_v12  ;;  %v3001_v27 = vld [vmem:[%s3766_s1 + $0xb0] sm:$0xff]   ;;  %v3005_v34 = vld [vmem:[%s3766_s1 + $0xb8] sm:$0xff]   ;;  %v3009_v0 = vld [vmem:[%s3766_s1 + $0x108] sm:$0xff]   ;;  %s3714_s27 = scalar_lea.vmem %s3770_s5, %s2189_s23 }
  0x11   : > { %2535 = vmatpush3.bf16.msra.mxu1 %v2985_v11  ;;  %s3165_s11 = scalar_lea.vmem %s3765_s0, %s2965_s26  ;;  %v3010_v9 = vld [vmem:[%s3766_s1 + $0x150] sm:$0xff]  }
  0x12   : > { %2536 = vmatprep.subr.bf16.mxu1 %v2988_v14  ;;  %v258_v31 = vld [vmem:[%s3165_s11 + $0x8] sm:$0xff]  ;;  %v265_v32 = vld [vmem:[%s3165_s11 + $0x40] sm:$0xff]  ;;  %v264_v36 = vld [vmem:[%s3165_s11 + $0x38] sm:$0xff] }
  0x13   : > { %2425 = vmatpush3.bf16.msra.mxu0 %v2987_v13  ;;  %v482_v33 = vpack.c.bf16 %v265_v32, %v258_v31  ;;  %v257_v35 = vld [vmem:[%s3165_s11] sm:$0xff]  ;;  %v260_v39 = vld [vmem:[%s3165_s11 + $0x18] sm:$0xff]  ;;  %v267_v40 = vld [vmem:[%s3165_s11 + $0x50] sm:$0xff] }
  0x14   : > { %2426 = vmatprep.subr.bf16.mxu0 %v2990_v16  ;;  %v481_v37 = vpack.c.bf16 %v264_v36, %v257_v35  ;;  %v484_v41 = vpack.c.bf16 %v267_v40, %v260_v39  ;;  %v259_v43 = vld [vmem:[%s3165_s11 + $0x10] sm:$0xff]  ;;  %v266_v44 = vld [vmem:[%s3165_s11 + $0x48] sm:$0xff]  ;;  %v272_v45 = vld [vmem:[%s3165_s11 + $0x78] sm:$0xff] }
  0x15   : > { %2537 = vmatpush3.bf16.msra.mxu1 %v2989_v15  ;;  %1073 = vmatprep.mubr.bf16.mxu0 %v482_v33  ;;  %v483_v46 = vpack.c.bf16 %v266_v44, %v259_v43  ;;  %v279_v47 = vld [vmem:[%s3165_s11 + $0xb0] sm:$0xff]  ;;  %v278_v49 = vld [vmem:[%s3165_s11 + $0xa8] sm:$0xff]  ;;  %v281_v52 = vld [vmem:[%s3165_s11 + $0xc0] sm:$0xff] }
  0x16   : > { %2538 = vmatprep.subr.bf16.mxu1 %v2992_v18  ;;  %1234 = vmatprep.mubr.bf16.mxu1 %v484_v41  ;;  %v271_v48 = vld [vmem:[%s3165_s11 + $0x70] sm:$0xff]  ;;  %v489_v50 = vpack.c.bf16 %v279_v47, %v272_v45  ;;  %v274_v51 = vld [vmem:[%s3165_s11 + $0x88] sm:$0xff]  ;;  %v293_v55 = vld [vmem:[%s3165_s11 + $0x120] sm:$0xff] }
  0x17   : > { %2427 = vmatpush3.bf16.msra.mxu0 %v2991_v17  ;;  %v491_v53 = vpack.c.bf16 %v281_v52, %v274_v51  ;;  %v286_v54 = vld [vmem:[%s3165_s11 + $0xe8] sm:$0xff]  ;;  %v488_v56 = vpack.c.bf16 %v278_v49, %v271_v48  ;;  %v273_v57 = vld [vmem:[%s3165_s11 + $0x80] sm:$0xff]  ;;  %v280_v58 = vld [vmem:[%s3165_s11 + $0xb8] sm:$0xff] }
  0x18   : > { %2428 = vmatprep.subr.bf16.mxu0 %v2994_v20  ;;  %v496_v59 = vpack.c.bf16 %v293_v55, %v286_v54  ;;  %v288_v61 = vld [vmem:[%s3165_s11 + $0xf8] sm:$0xff]  ;;  %v295_v62 = vld [vmem:[%s3165_s11 + $0x130] sm:$0xff]  ;;  %v490_v63 = vpack.c.bf16 %v280_v58, %v273_v57  ;;  %v285_v2 = vld [vmem:[%s3165_s11 + $0xe0] sm:$0xff] }
  0x19   : > { %2539 = vmatpush3.bf16.msra.mxu1 %v2993_v19  ;;  %v498_v1 = vpack.c.bf16 %v295_v62, %v288_v61  ;;  %v292_v3 = vld [vmem:[%s3165_s11 + $0x118] sm:$0xff]  ;;  %v307_v5 = vld [vmem:[%s3165_s11 + $0x190] sm:$0xff]  ;;  %v294_v7 = vld [vmem:[%s3165_s11 + $0x128] sm:$0xff] }
  0x1a   : > { %2540 = vmatprep.subr.bf16.mxu1 %v2996_v22  ;;  %v300_v4 = vld [vmem:[%s3165_s11 + $0x158] sm:$0xff]  ;;  %v287_v6 = vld [vmem:[%s3165_s11 + $0xf0] sm:$0xff]  ;;  %v495_v8 = vpack.c.bf16 %v292_v3, %v285_v2  ;;  %v302_v11 = vld [vmem:[%s3165_s11 + $0x168] sm:$0xff] }
  0x1b   : > { %2429 = vmatpush3.bf16.msra.mxu0 %v2995_v21  ;;  %v503_v10 = vpack.c.bf16 %v307_v5, %v300_v4  ;;  %v309_v12 = vld [vmem:[%s3165_s11 + $0x1a0] sm:$0xff]  ;;  %v3011_v13 = vld [vmem:[%s3766_s1 + $0x110] sm:$0xff]   ;;  %v497_v14 = vpack.c.bf16 %v294_v7, %v287_v6  ;;  %v306_v17 = vld [vmem:[%s3165_s11 + $0x188] sm:$0xff] }
  0x1c   : > { %2430 = vmatprep.subr.bf16.mxu0 %v2998_v24  ;;  %v505_v15 = vpack.c.bf16 %v309_v12, %v302_v11  ;;  %v299_v16 = vld [vmem:[%s3165_s11 + $0x150] sm:$0xff]  ;;  %v301_v18 = vld [vmem:[%s3165_s11 + $0x160] sm:$0xff]  ;;  %v314_v19 = vld [vmem:[%s3165_s11 + $0x1c8] sm:$0xff] }
  0x1d   : > { %2541 = vmatpush3.bf16.msra.mxu1 %v2997_v23  ;;  %v321_v20 = vld [vmem:[%s3165_s11 + $0x200] sm:$0xff]  ;;  %v308_v21 = vld [vmem:[%s3165_s11 + $0x198] sm:$0xff]  ;;  %v502_v22 = vpack.c.bf16 %v306_v17, %v299_v16  ;;  %v323_v24 = vld [vmem:[%s3165_s11 + $0x210] sm:$0xff] }
  0x1e   : > { %2542 = vmatprep.subr.bf16.mxu1 %v3000_v26  ;;  %v316_v23 = vld [vmem:[%s3165_s11 + $0x1d8] sm:$0xff]  ;;  %v510_v26 = vpack.c.bf16 %v321_v20, %v314_v19  ;;  %v315_v32 = vld [vmem:[%s3165_s11 + $0x1d0] sm:$0xff]  ;;  %v322_v33 = vld [vmem:[%s3165_s11 + $0x208] sm:$0xff] }
  0x1f   : > { %2431 = vmatpush3.bf16.msra.mxu0 %v2999_v25  ;;  %v3012_v25 = vld [vmem:[%s3766_s1 + $0x158] sm:$0xff]   ;;  %v335_v35 = vld [vmem:[%s3165_s11 + $0x270] sm:$0xff]  ;;  %v3014_v36 = vld [vmem:[%s3766_s1 + $0x160] sm:$0xff]   ;;  %v511_v43 = vpack.c.bf16 %v322_v33, %v315_v32 }
  0x20   : > { %2432 = vmatprep.subr.bf16.mxu0 %v3002_v28  ;;  %v504_v28 = vpack.c.bf16 %v308_v21, %v301_v18  ;;  %v320_v31 = vld [vmem:[%s3165_s11 + $0x1f8] sm:$0xff]  ;;  %v3015_v39 = vld [vmem:[%s3766_s1 + $0x180] sm:$0xff]   ;;  %v327_v45 = vld [vmem:[%s3165_s11 + $0x230] sm:$0xff] }
  0x21   : > { %2543 = vmatpush3.bf16.msra.mxu1 %v3001_v27  ;;  %v3013_v27 = vld [vmem:[%s3766_s1 + $0x118] sm:$0xff]   ;;  %v337_v41 = vld [vmem:[%s3165_s11 + $0x280] sm:$0xff]  ;;  %v342_v48 = vld [vmem:[%s3165_s11 + $0x2a8] sm:$0xff] }
  0x22   : > { %2544 = vmatprep.subr.bf16.mxu1 %v3004_v30  ;;  %v313_v30 = vld [vmem:[%s3165_s11 + $0x1c0] sm:$0xff]  ;;  %v336_v52 = vld [vmem:[%s3165_s11 + $0x278] sm:$0xff]  ;;  %v351_v55 = vld [vmem:[%s3165_s11 + $0x2f0] sm:$0xff] }
  0x23   : > { %2433 = vmatpush3.bf16.msra.mxu0 %v3003_v29  ;;  %v512_v29 = vpack.c.bf16 %v323_v24, %v316_v23  ;;  %v329_v47 = vld [vmem:[%s3165_s11 + $0x240] sm:$0xff]  ;;  %v356_v61 = vld [vmem:[%s3165_s11 + $0x318] sm:$0xff]  ;;  %v363_v62 = vld [vmem:[%s3165_s11 + $0x350] sm:$0xff] }
  0x24   : > { %2642 = vmatprep.subr.bf16.mxu0 %v3006_v38  ;;  %v330_v38 = vld [vmem:[%s3165_s11 + $0x248] sm:$0xff]  ;;  %v349_v49 = vld [vmem:[%s3165_s11 + $0x2e0] sm:$0xff]  ;;  %v518_v57 = vpack.c.bf16 %v336_v52, %v329_v47  ;;  %v3020_v3 = vld [vmem:[%s3766_s1 + $0x130] sm:$0xff]   ;;  %v531_v4 = vpack.c.bf16 %v363_v62, %v356_v61 }
  0x25   : > { %2545 = vmatpush3.bf16.msra.mxu1 %v3005_v34  ;;  %v328_v34 = vld [vmem:[%s3165_s11 + $0x238] sm:$0xff]  ;;  %v519_v44 = vpack.c.bf16 %v337_v41, %v330_v38  ;;  %v524_v54 = vpack.c.bf16 %v349_v49, %v342_v48  ;;  %v358_v5 = vld [vmem:[%s3165_s11 + $0x328] sm:$0xff]  ;;  %v365_v6 = vld [vmem:[%s3165_s11 + $0x360] sm:$0xff] }
  0x26   : > { %1074 = vmatmul.mubr.bf16.vlgmr.msra.gmra.mrb[0].mxu0 %v481_v37  ;;  %v509_v37 = vpack.c.bf16 %v320_v31, %v313_v30  ;;  %v517_v40 = vpack.c.bf16 %v335_v35, %v328_v34  ;;  %2819 = vmatprep.subr.bf16.mxu1 %v3015_v39  ;;  %v370_v11 = vld [vmem:[%s3165_s11 + $0x388] sm:$0xff]  ;;  %v377_v12 = vld [vmem:[%s3165_s11 + $0x3c0] sm:$0xff]  ;;  %v364_v16 = vld [vmem:[%s3165_s11 + $0x358] sm:$0xff] }
  0x27   : > { %2643 = vmatpush3.bf16.msra.mxu0 %v3007_v42  ;;  %1081 = vmatprep.mubr.bf16.mxu0 %v489_v50  ;;  %v3016_v42 = vld [vmem:[%s3766_s1 + $0x120] sm:$0xff]   ;;  %v3017_v50 = vld [vmem:[%s3766_s1 + $0x168] sm:$0xff]   ;;  %v3022_v17 = vld [vmem:[%s3766_s1 + $0x138] sm:$0xff]   ;;  %v538_v18 = vpack.c.bf16 %v377_v12, %v370_v11 }
  0x28   : > { %1235 = vmatmul.mubr.bf16.vlgmr.msra.gmra.mrb[0].mxu1 %v483_v46  ;;  %2644 = vmatprep.subr.bf16.mxu0 %v3008_v60  ;;  %v334_v46 = vld [vmem:[%s3165_s11 + $0x268] sm:$0xff]  ;;  %v348_v60 = vld [vmem:[%s3165_s11 + $0x2d8] sm:$0xff]  ;;  %v379_v20 = vld [vmem:[%s3165_s11 + $0x3d0] sm:$0xff] }
  0x29   : > { %1242 = vmatprep.mubr.bf16.mxu1 %v491_v53  ;;  %2820 = vmatpush3.bf16.msra.mxu1 %v3015_v39  ;;  %v516_v51 = vpack.c.bf16 %v334_v46, %v327_v45  ;;  %v344_v53 = vld [vmem:[%s3165_s11 + $0x2b8] sm:$0xff]  ;;  %v369_v23 = vld [vmem:[%s3165_s11 + $0x380] sm:$0xff]  ;;  %v386_v31 = vld [vmem:[%s3165_s11 + $0x408] sm:$0xff] }
  0x2a   : > { %v526_v58 = vpack.c.bf16 %v351_v55, %v344_v53  ;;  %v372_v19 = vld [vmem:[%s3165_s11 + $0x398] sm:$0xff]  ;;  %v393_v32 = vld [vmem:[%s3165_s11 + $0x440] sm:$0xff]  ;;  %v383_v35 = vld [vmem:[%s3165_s11 + $0x3f0] sm:$0xff] }
  0x2b   : > { %2645 = vmatpush3.bf16.msra.mxu0 %v3009_v0  ;;  %v350_v0 = vld [vmem:[%s3165_s11 + $0x2e8] sm:$0xff]  ;;  %v376_v24 = vld [vmem:[%s3165_s11 + $0x3b8] sm:$0xff]  ;;  %v547_v34 = vpack.c.bf16 %v393_v32, %v386_v31  ;;  %v405_v38 = vld [vmem:[%s3165_s11 + $0x4a0] sm:$0xff] }
  0x2c   : > { %2646 = vmatprep.subr.bf16.mxu0 %v3010_v9  ;;  %v533_v9 = vpack.c.bf16 %v365_v6, %v358_v5  ;;  %v392_v41 = vld [vmem:[%s3165_s11 + $0x438] sm:$0xff]  ;;  %v397_v47 = vld [vmem:[%s3165_s11 + $0x460] sm:$0xff]  ;;  %v399_v52 = vld [vmem:[%s3165_s11 + $0x470] sm:$0xff] }
  0x2d   : > { %v404_v48 = vld [vmem:[%s3165_s11 + $0x498] sm:$0xff]  ;;  %v406_v53 = vld [vmem:[%s3165_s11 + $0x4a8] sm:$0xff]  ;;  %v433_v62 = vld [vmem:[%s3165_s11 + $0x580] sm:$0xff] }
  0x2e   : > { %1082 = vmatmul.mubr.bf16.gmra.mrb[4].mxu0 %v488_v56  ;;  %v3018_v56 = vld [vmem:[%s3766_s1 + $0x128] sm:$0xff]   ;;  %v412_v49 = vld [vmem:[%s3165_s11 + $0x4d8] sm:$0xff]  ;;  %v427_v12 = vld [vmem:[%s3165_s11 + $0x550] sm:$0xff] }
  0x2f   : > { %1089 = vmatprep.mubr.bf16.mxu0 %v496_v59  ;;  %2647 = vmatpush3.bf16.msra.mxu0 %v3011_v13  ;;  %v341_v59 = vld [vmem:[%s3165_s11 + $0x2a0] sm:$0xff]  ;;  %v3021_v13 = vld [vmem:[%s3766_s1 + $0x178] sm:$0xff]   ;;  %v414_v55 = vld [vmem:[%s3165_s11 + $0x4e8] sm:$0xff] }
  0x30   : > { %1243 = vmatmul.mubr.bf16.gmra.mrb[4].mxu1 %v490_v63  ;;  %2648 = vmatprep.subr.bf16.mxu0 %v3012_v25  ;;  %v343_v63 = vld [vmem:[%s3165_s11 + $0x2b0] sm:$0xff]  ;;  %v523_v2 = vpack.c.bf16 %v348_v60, %v341_v59  ;;  %v384_v25 = vld [vmem:[%s3165_s11 + $0x3f8] sm:$0xff]  ;;  %v418_v60 = vld [vmem:[%s3165_s11 + $0x508] sm:$0xff] }
  0x31   : > { %1250 = vmatprep.mubr.bf16.mxu1 %v498_v1  ;;  %v3019_v1 = vld [vmem:[%s3766_s1 + $0x170] sm:$0xff]   ;;  %v525_v7 = vpack.c.bf16 %v350_v0, %v343_v63  ;;  %v426_v61 = vld [vmem:[%s3165_s11 + $0x548] sm:$0xff]  ;;  %v413_v0 = vld [vmem:[%s3165_s11 + $0x4e0] sm:$0xff] }
  0x32   : > { %v411_v59 = vld [vmem:[%s3165_s11 + $0x4d0] sm:$0xff]  ;;  %v453_v31 = vld [vmem:[%s3165_s11 + $0x620] sm:$0xff]  ;;  %v460_v32 = vld [vmem:[%s3165_s11 + $0x658] sm:$0xff] }
  0x33   : > { %2649 = vmatpush3.bf16.msra.mxu0 %v3013_v27  ;;  %v537_v27 = vpack.c.bf16 %v376_v24, %v369_v23  ;;  %v558_v63 = vpack.c.bf16 %v418_v60, %v411_v59  ;;  %v441_v24 = vld [vmem:[%s3165_s11 + $0x5c0] sm:$0xff] }
  0x34   : > { %2650 = vmatprep.subr.bf16.mxu0 %v3014_v36  ;;  %v390_v36 = vld [vmem:[%s3165_s11 + $0x428] sm:$0xff]  ;;  %v277_v60 = vld [vmem:[%s3165_s11 + $0xa0] sm:$0xff] }
  0x35   : > { %v544_v39 = vpack.c.bf16 %v390_v36, %v383_v35  ;;  %v579_v35 = vpack.c.bf16 %v460_v32, %v453_v31  ;;  %v455_v36 = vld [vmem:[%s3165_s11 + $0x630] sm:$0xff]  ;;  %v361_v32 = vld [vmem:[%s3165_s11 + $0x340] sm:$0xff] }
  0x36   : > { %1090 = vmatmul.mubr.bf16.gmra.mrb[8].mxu0 %v495_v8  ;;  %v355_v8 = vld [vmem:[%s3165_s11 + $0x310] sm:$0xff] }
  0x37   : > { %1097 = vmatprep.mubr.bf16.mxu0 %v503_v10  ;;  %2651 = vmatpush3.bf16.msra.mxu0 %v3016_v42  ;;  %v362_v10 = vld [vmem:[%s3165_s11 + $0x348] sm:$0xff] }
  0x38   : > { %1251 = vmatmul.mubr.bf16.gmra.mrb[8].mxu1 %v497_v14  ;;  %2652 = vmatprep.subr.bf16.mxu0 %v3017_v50  ;;  %v530_v14 = vpack.c.bf16 %v362_v10, %v355_v8  ;;  %v419_v50 = vld [vmem:[%s3165_s11 + $0x510] sm:$0xff]  ;;  %v432_v8 = vld [vmem:[%s3165_s11 + $0x578] sm:$0xff] }
  0x39   : > { %1258 = vmatprep.mubr.bf16.mxu1 %v505_v15  ;;  %v357_v15 = vld [vmem:[%s3165_s11 + $0x320] sm:$0xff]  ;;  %v447_v10 = vld [vmem:[%s3165_s11 + $0x5f0] sm:$0xff] }
  0x3a   : > { %v532_v21 = vpack.c.bf16 %v364_v16, %v357_v15  ;;  %v442_v15 = vld [vmem:[%s3165_s11 + $0x5c8] sm:$0xff]  ;;  %v449_v16 = vld [vmem:[%s3165_s11 + $0x600] sm:$0xff] }
  0x3b   : > { %2653 = vmatpush3.bf16.msra.mxu0 %v3018_v56  ;;  %v421_v56 = vld [vmem:[%s3165_s11 + $0x520] sm:$0xff] }
  0x3c   : > { %2654 = vmatprep.subr.bf16.mxu0 %v3019_v1  ;;  %v420_v1 = vld [vmem:[%s3165_s11 + $0x518] sm:$0xff] }
  0x3d   : > { %v560_v5 = vpack.c.bf16 %v420_v1, %v413_v0  ;;  %v298_v0 = vld [vmem:[%s3165_s11 + $0x148] sm:$0xff] }
  0x3e   : > { %1098 = vmatmul.mubr.bf16.gmra.mrb[12].mxu0 %v502_v22  ;;  %v540_v22 = vpack.c.bf16 %v379_v20, %v372_v19  ;;  %v439_v19 = vld [vmem:[%s3165_s11 + $0x5b0] sm:$0xff]  ;;  %v446_v20 = vld [vmem:[%s3165_s11 + $0x5e8] sm:$0xff] }
  0x3f   : > { %1105 = vmatprep.mubr.bf16.mxu0 %v510_v26  ;;  %2655 = vmatpush3.bf16.msra.mxu0 %v3020_v3  ;;  %v391_v26 = vld [vmem:[%s3165_s11 + $0x430] sm:$0xff]  ;;  %v428_v3 = vld [vmem:[%s3165_s11 + $0x558] sm:$0xff]  ;;  %v572_v23 = vpack.c.bf16 %v446_v20, %v439_v19  ;;  %v333_v20 = vld [vmem:[%s3165_s11 + $0x260] sm:$0xff] }
  0x40   : > { %1259 = vmatmul.mubr.bf16.gmra.mrb[12].mxu1 %v504_v28  ;;  %2656 = vmatprep.subr.bf16.mxu0 %v3021_v13  ;;  %v371_v28 = vld [vmem:[%s3165_s11 + $0x390] sm:$0xff]  ;;  %v545_v30 = vpack.c.bf16 %v391_v26, %v384_v25  ;;  %v434_v13 = vld [vmem:[%s3165_s11 + $0x588] sm:$0xff]  ;;  %v448_v25 = vld [vmem:[%s3165_s11 + $0x5f8] sm:$0xff] }
  0x41   : > { %1266 = vmatprep.mubr.bf16.mxu1 %v512_v29  ;;  %v378_v29 = vld [vmem:[%s3165_s11 + $0x3c8] sm:$0xff] }
  0x42   : > { %v539_v33 = vpack.c.bf16 %v378_v29, %v371_v28  ;;  %v463_v28 = vld [vmem:[%s3165_s11 + $0x670] sm:$0xff]  ;;  %v574_v29 = vpack.c.bf16 %v448_v25, %v441_v24  ;;  %v354_v24 = vld [vmem:[%s3165_s11 + $0x308] sm:$0xff] }
  0x43   : > { %2657 = vmatpush3.bf16.msra.mxu0 %v3022_v17  ;;  %v567_v17 = vpack.c.bf16 %v434_v13, %v427_v12  ;;  %v326_v12 = vld [vmem:[%s3165_s11 + $0x228] sm:$0xff] }
  0x46   : > { %1106 = vmatmul.mubr.bf16.gmra.mrb[16].mxu0 %v509_v37  ;;  %v398_v37 = vld [vmem:[%s3165_s11 + $0x468] sm:$0xff] }
  0x47   : > { %1113 = vmatprep.mubr.bf16.mxu0 %v517_v40  ;;  %v385_v40 = vld [vmem:[%s3165_s11 + $0x400] sm:$0xff]  ;;  %v552_v42 = vpack.c.bf16 %v405_v38, %v398_v37  ;;  %v462_v37 = vld [vmem:[%s3165_s11 + $0x668] sm:$0xff] }
  0x48   : > { %1267 = vmatmul.mubr.bf16.gmra.mrb[16].mxu1 %v511_v43  ;;  %v400_v43 = vld [vmem:[%s3165_s11 + $0x478] sm:$0xff]  ;;  %v546_v45 = vpack.c.bf16 %v392_v41, %v385_v40  ;;  %v477_v40 = vld [vmem:[%s3165_s11 + $0x6e0] sm:$0xff]  ;;  %v581_v41 = vpack.c.bf16 %v462_v37, %v455_v36  ;;  %v382_v36 = vld [vmem:[%s3165_s11 + $0x3e8] sm:$0xff] }
  0x49   : > { %1274 = vmatprep.mubr.bf16.mxu1 %v519_v44  ;;  %v407_v44 = vld [vmem:[%s3165_s11 + $0x4b0] sm:$0xff] }
  0x4a   : > { %v554_v46 = vpack.c.bf16 %v407_v44, %v400_v43  ;;  %v467_v43 = vld [vmem:[%s3165_s11 + $0x690] sm:$0xff]  ;;  %v474_v44 = vld [vmem:[%s3165_s11 + $0x6c8] sm:$0xff] }
  0x4e   : > { %1114 = vmatmul.mubr.bf16.gmra.mrb[20].mxu0 %v516_v51  ;;  %v551_v51 = vpack.c.bf16 %v404_v48, %v397_v47  ;;  %v586_v47 = vpack.c.bf16 %v474_v44, %v467_v43  ;;  %v469_v48 = vld [vmem:[%s3165_s11 + $0x6a0] sm:$0xff] }
  0x4f   : > { %1121 = vmatprep.mubr.bf16.mxu0 %v524_v54  ;;  %v559_v54 = vpack.c.bf16 %v419_v50, %v412_v49  ;;  %v476_v49 = vld [vmem:[%s3165_s11 + $0x6d8] sm:$0xff]  ;;  %v389_v44 = vld [vmem:[%s3165_s11 + $0x420] sm:$0xff] }
  0x50   : > { %1275 = vmatmul.mubr.bf16.gmra.mrb[20].mxu1 %v518_v57  ;;  %v553_v57 = vpack.c.bf16 %v406_v53, %v399_v52  ;;  %v270_v52 = vld [vmem:[%s3165_s11 + $0x68] sm:$0xff]  ;;  %v588_v53 = vpack.c.bf16 %v476_v49, %v469_v48 }
  0x51   : > { %1282 = vmatprep.mubr.bf16.mxu1 %v526_v58  ;;  %v561_v58 = vpack.c.bf16 %v421_v56, %v414_v55  ;;  %v261_v55 = vld [vmem:[%s3165_s11 + $0x20] sm:$0xff]  ;;  %v268_v56 = vld [vmem:[%s3165_s11 + $0x58] sm:$0xff]  ;;  %v410_v48 = vld [vmem:[%s3165_s11 + $0x4c8] sm:$0xff] }
  0x52   : > { %v485_v59 = vpack.c.bf16 %v268_v56, %v261_v55  ;;  %v417_v56 = vld [vmem:[%s3165_s11 + $0x500] sm:$0xff] }
  0x56   : > { %1122 = vmatmul.mubr.bf16.gmra.mrb[24].mxu0 %v523_v2  ;;  %v566_v2 = vpack.c.bf16 %v433_v62, %v426_v61  ;;  %v284_v61 = vld [vmem:[%s3165_s11 + $0xd8] sm:$0xff] }
  0x57   : > { %1129 = vmatprep.mubr.bf16.mxu0 %v531_v4  ;;  %v435_v4 = vld [vmem:[%s3165_s11 + $0x590] sm:$0xff]  ;;  %v494_v1 = vpack.c.bf16 %v284_v61, %v277_v60  ;;  %v438_v60 = vld [vmem:[%s3165_s11 + $0x5a8] sm:$0xff] }
  0x58   : > { %1283 = vmatmul.mubr.bf16.gmra.mrb[24].mxu1 %v525_v7  ;;  %v568_v6 = vpack.c.bf16 %v435_v4, %v428_v3  ;;  %v425_v7 = vld [vmem:[%s3165_s11 + $0x540] sm:$0xff]  ;;  %v275_v3 = vld [vmem:[%s3165_s11 + $0x90] sm:$0xff]  ;;  %v282_v4 = vld [vmem:[%s3165_s11 + $0xc8] sm:$0xff] }
  0x59   : > { %1290 = vmatprep.mubr.bf16.mxu1 %v533_v9  ;;  %v440_v9 = vld [vmem:[%s3165_s11 + $0x5b8] sm:$0xff]  ;;  %v565_v11 = vpack.c.bf16 %v432_v8, %v425_v7  ;;  %v492_v7 = vpack.c.bf16 %v282_v4, %v275_v3  ;;  %v305_v8 = vld [vmem:[%s3165_s11 + $0x180] sm:$0xff] }
  0x5a   : > { %v445_v4 = vld [vmem:[%s3165_s11 + $0x5e0] sm:$0xff] }
  0x5e   : > { %1130 = vmatmul.mubr.bf16.gmra.mrb[28].mxu0 %v530_v14  ;;  %v573_v14 = vpack.c.bf16 %v447_v10, %v440_v9  ;;  %v312_v9 = vld [vmem:[%s3165_s11 + $0x1b8] sm:$0xff] }
  0x5f   : > { %1137 = vmatprep.mubr.bf16.mxu0 %v538_v18  ;;  %v575_v18 = vpack.c.bf16 %v449_v16, %v442_v15  ;;  %v508_v13 = vpack.c.bf16 %v312_v9, %v305_v8  ;;  %v289_v15 = vld [vmem:[%s3165_s11 + $0x100] sm:$0xff]  ;;  %v296_v16 = vld [vmem:[%s3165_s11 + $0x138] sm:$0xff]  ;;  %v466_v8 = vld [vmem:[%s3165_s11 + $0x688] sm:$0xff] }
  0x60   : > { %1291 = vmatmul.mubr.bf16.gmra.mrb[28].mxu1 %v532_v21  ;;  %v454_v21 = vld [vmem:[%s3165_s11 + $0x628] sm:$0xff]  ;;  %v499_v19 = vpack.c.bf16 %v296_v16, %v289_v15  ;;  %v473_v16 = vld [vmem:[%s3165_s11 + $0x6c0] sm:$0xff] }
  0x61   : > { %1298 = vmatprep.mubr.bf16.mxu1 %v540_v22  ;;  %v461_v22 = vld [vmem:[%s3165_s11 + $0x660] sm:$0xff] }
  0x62   : > { %v580_v26 = vpack.c.bf16 %v461_v22, %v454_v21  ;;  %v340_v21 = vld [vmem:[%s3165_s11 + $0x298] sm:$0xff] }
  0x63   : > { %v522_v25 = vpack.c.bf16 %v340_v21, %v333_v20  ;;  %v373_v20 = vld [vmem:[%s3165_s11 + $0x3a0] sm:$0xff]  ;;  %v380_v21 = vld [vmem:[%s3165_s11 + $0x3d8] sm:$0xff] }
  0x66   : > { %1138 = vmatmul.mubr.bf16.gmra.mrb[32].mxu0 %v537_v27  ;;  %v456_v27 = vld [vmem:[%s3165_s11 + $0x638] sm:$0xff] }
  0x67   : > { %1145 = vmatprep.mubr.bf16.mxu0 %v545_v30  ;;  %v582_v30 = vpack.c.bf16 %v463_v28, %v456_v27  ;;  %v303_v27 = vld [vmem:[%s3165_s11 + $0x170] sm:$0xff]  ;;  %v310_v28 = vld [vmem:[%s3165_s11 + $0x1a8] sm:$0xff] }
  0x68   : > { %1299 = vmatmul.mubr.bf16.gmra.mrb[32].mxu1 %v539_v33  ;;  %v468_v33 = vld [vmem:[%s3165_s11 + $0x698] sm:$0xff]  ;;  %v506_v31 = vpack.c.bf16 %v310_v28, %v303_v27  ;;  %v1718_v27 = vld [vmem:[%s3768_s3 + $0x8] sm:$0xff] }
  0x69   : > { %1306 = vmatprep.mubr.bf16.mxu1 %v547_v34  ;;  %v475_v34 = vld [vmem:[%s3165_s11 + $0x6d0] sm:$0xff] }
  0x6a   : > { %v587_v38 = vpack.c.bf16 %v475_v34, %v468_v33  ;;  %v368_v33 = vld [vmem:[%s3165_s11 + $0x378] sm:$0xff] }
  0x6b   : > { %v536_v37 = vpack.c.bf16 %v368_v33, %v361_v32  ;;  %v1720_v32 = vld [vmem:[%s3768_s3 + $0x18] sm:$0xff]  ;;  %v402_v33 = vld [vmem:[%s3165_s11 + $0x488] sm:$0xff] }
  0x6e   : > { %1146 = vmatmul.mubr.bf16.gmra.mrb[36].mxu0 %v544_v39  ;;  %v470_v39 = vld [vmem:[%s3165_s11 + $0x6a8] sm:$0xff] }
  0x6f   : > { %1153 = vmatprep.mubr.bf16.mxu0 %v552_v42  ;;  %v589_v42 = vpack.c.bf16 %v477_v40, %v470_v39  ;;  %v317_v39 = vld [vmem:[%s3165_s11 + $0x1e0] sm:$0xff]  ;;  %v324_v40 = vld [vmem:[%s3165_s11 + $0x218] sm:$0xff] }
  0x70   : > { %1307 = vmatmul.mubr.bf16.gmra.mrb[36].mxu1 %v546_v45  ;;  %v262_v45 = vld [vmem:[%s3165_s11 + $0x28] sm:$0xff]  ;;  %v513_v43 = vpack.c.bf16 %v324_v40, %v317_v39 }
  0x71   : > { %1314 = vmatprep.mubr.bf16.mxu1 %v554_v46  ;;  %v269_v46 = vld [vmem:[%s3165_s11 + $0x60] sm:$0xff]  ;;  %v1722_v39 = vld [vmem:[%s3768_s3 + $0x28] sm:$0xff] }
  0x72   : > { %v486_v50 = vpack.c.bf16 %v269_v46, %v262_v45  ;;  %v396_v45 = vld [vmem:[%s3165_s11 + $0x458] sm:$0xff] }
  0x73   : > { %v550_v49 = vpack.c.bf16 %v396_v45, %v389_v44  ;;  %v1724_v44 = vld [vmem:[%s3768_s3 + $0x38] sm:$0xff] }
  0x74   : > { %v416_v45 = vld [vmem:[%s3165_s11 + $0x4f8] sm:$0xff] }
  0x76   : > { %1154 = vmatmul.mubr.bf16.gmra.mrb[40].mxu0 %v551_v51  ;;  %v263_v51 = vld [vmem:[%s3165_s11 + $0x30] sm:$0xff] }
  0x77   : > { %1161 = vmatprep.mubr.bf16.mxu0 %v559_v54  ;;  %v487_v54 = vpack.c.bf16 %v270_v52, %v263_v51  ;;  %v331_v51 = vld [vmem:[%s3165_s11 + $0x250] sm:$0xff]  ;;  %v338_v52 = vld [vmem:[%s3165_s11 + $0x288] sm:$0xff] }
  0x78   : > { %1315 = vmatmul.mubr.bf16.gmra.mrb[40].mxu1 %v553_v57  ;;  %v276_v57 = vld [vmem:[%s3165_s11 + $0x98] sm:$0xff]  ;;  %v520_v55 = vpack.c.bf16 %v338_v52, %v331_v51  ;;  %v1726_v51 = vld [vmem:[%s3768_s3 + $0x48] sm:$0xff] }
  0x79   : > { %1322 = vmatprep.mubr.bf16.mxu1 %v561_v58  ;;  %v283_v58 = vld [vmem:[%s3165_s11 + $0xd0] sm:$0xff] }
  0x7a   : > { %v493_v62 = vpack.c.bf16 %v283_v58, %v276_v57  ;;  %v424_v57 = vld [vmem:[%s3165_s11 + $0x538] sm:$0xff] }
  0x7b   : > { %v564_v61 = vpack.c.bf16 %v424_v57, %v417_v56  ;;  %v1728_v56 = vld [vmem:[%s3768_s3 + $0x58] sm:$0xff]  ;;  %v430_v57 = vld [vmem:[%s3165_s11 + $0x568] sm:$0xff] }
  0x7e   : > { %1162 = vmatmul.mubr.bf16.gmra.mrb[44].mxu0 %v558_v63  ;;  %v291_v63 = vld [vmem:[%s3165_s11 + $0x110] sm:$0xff] }
  0x7f   : > { %1169 = vmatprep.mubr.bf16.mxu0 %v566_v2  ;;  %v501_v2 = vpack.c.bf16 %v298_v0, %v291_v63  ;;  %v345_v63 = vld [vmem:[%s3165_s11 + $0x2c0] sm:$0xff]  ;;  %v352_v0 = vld [vmem:[%s3165_s11 + $0x2f8] sm:$0xff] }
  0x80   : > { %1323 = vmatmul.mubr.bf16.gmra.mrb[44].mxu1 %v560_v5  ;;  %v290_v5 = vld [vmem:[%s3165_s11 + $0x108] sm:$0xff]  ;;  %v527_v3 = vpack.c.bf16 %v352_v0, %v345_v63 }
  0x81   : > { %1330 = vmatprep.mubr.bf16.mxu1 %v568_v6  ;;  %v297_v6 = vld [vmem:[%s3165_s11 + $0x140] sm:$0xff] }
  0x82   : > { %v500_v10 = vpack.c.bf16 %v297_v6, %v290_v5  ;;  %v452_v5 = vld [vmem:[%s3165_s11 + $0x618] sm:$0xff] }
  0x83   : > { %v578_v9 = vpack.c.bf16 %v452_v5, %v445_v4  ;;  %v1730_v4 = vld [vmem:[%s3768_s3 + $0x68] sm:$0xff] }
  0x86   : > { %1170 = vmatmul.mubr.bf16.gmra.mrb[48].mxu0 %v565_v11  ;;  %v319_v11 = vld [vmem:[%s3165_s11 + $0x1f0] sm:$0xff] }
  0x87   : > { %1177 = vmatprep.mubr.bf16.mxu0 %v573_v14  ;;  %v515_v14 = vpack.c.bf16 %v326_v12, %v319_v11  ;;  %v359_v11 = vld [vmem:[%s3165_s11 + $0x330] sm:$0xff]  ;;  %v366_v12 = vld [vmem:[%s3165_s11 + $0x368] sm:$0xff] }
  0x88   : > { %1331 = vmatmul.mubr.bf16.gmra.mrb[48].mxu1 %v567_v17  ;;  %v304_v17 = vld [vmem:[%s3165_s11 + $0x178] sm:$0xff]  ;;  %v534_v15 = vpack.c.bf16 %v366_v12, %v359_v11 }
  0x89   : > { %1338 = vmatprep.mubr.bf16.mxu1 %v575_v18  ;;  %v311_v18 = vld [vmem:[%s3165_s11 + $0x1b0] sm:$0xff] }
  0x8a   : > { %v507_v22 = vpack.c.bf16 %v311_v18, %v304_v17  ;;  %v480_v17 = vld [vmem:[%s3165_s11 + $0x6f8] sm:$0xff] }
  0x8e   : > { %1178 = vmatmul.mubr.bf16.gmra.mrb[52].mxu0 %v572_v23  ;;  %v347_v23 = vld [vmem:[%s3165_s11 + $0x2d0] sm:$0xff] }
  0x8f   : > { %1185 = vmatprep.mubr.bf16.mxu0 %v580_v26  ;;  %v529_v26 = vpack.c.bf16 %v354_v24, %v347_v23  ;;  %v395_v23 = vld [vmem:[%s3165_s11 + $0x450] sm:$0xff]  ;;  %v541_v24 = vpack.c.bf16 %v380_v21, %v373_v20  ;;  %v444_v21 = vld [vmem:[%s3165_s11 + $0x5d8] sm:$0xff] }
  0x90   : > { %1339 = vmatmul.mubr.bf16.gmra.mrb[52].mxu1 %v574_v29  ;;  %v318_v29 = vld [vmem:[%s3165_s11 + $0x1e8] sm:$0xff] }
  0x91   : > { %1346 = vmatprep.mubr.bf16.mxu1 %v582_v30  ;;  %v325_v30 = vld [vmem:[%s3165_s11 + $0x220] sm:$0xff] }
  0x92   : > { %v514_v34 = vpack.c.bf16 %v325_v30, %v318_v29  ;;  %v387_v29 = vld [vmem:[%s3165_s11 + $0x410] sm:$0xff]  ;;  %v394_v30 = vld [vmem:[%s3165_s11 + $0x448] sm:$0xff] }
  0x96   : > { %1186 = vmatmul.mubr.bf16.gmra.mrb[56].mxu0 %v579_v35  ;;  %v375_v35 = vld [vmem:[%s3165_s11 + $0x3b0] sm:$0xff] }
  0x97   : > { %1193 = vmatprep.mubr.bf16.mxu0 %v587_v38  ;;  %v543_v38 = vpack.c.bf16 %v382_v36, %v375_v35  ;;  %v548_v36 = vpack.c.bf16 %v394_v30, %v387_v29 }
  0x98   : > { %1347 = vmatmul.mubr.bf16.gmra.mrb[56].mxu1 %v581_v41  ;;  %v332_v41 = vld [vmem:[%s3165_s11 + $0x258] sm:$0xff] }
  0x99   : > { %1354 = vmatprep.mubr.bf16.mxu1 %v589_v42  ;;  %v339_v42 = vld [vmem:[%s3165_s11 + $0x290] sm:$0xff] }
  0x9a   : > { %v521_v46 = vpack.c.bf16 %v339_v42, %v332_v41  ;;  %v401_v41 = vld [vmem:[%s3165_s11 + $0x480] sm:$0xff]  ;;  %v408_v42 = vld [vmem:[%s3165_s11 + $0x4b8] sm:$0xff] }
  0x9e   : > { %1194 = vmatmul.mubr.bf16.gmra.mrb[60].mxu0 %v586_v47  ;;  %v403_v47 = vld [vmem:[%s3165_s11 + $0x490] sm:$0xff] }
  0x9f   : > { %1395 = vmatprep.mubr.bf16.mxu0 %v486_v50  ;;  %v557_v50 = vpack.c.bf16 %v410_v48, %v403_v47  ;;  %v555_v48 = vpack.c.bf16 %v408_v42, %v401_v41  ;;  %v450_v41 = vld [vmem:[%s3165_s11 + $0x608] sm:$0xff] }
  0xa0   : > { %1355 = vmatmul.mubr.bf16.gmra.mrb[60].mxu1 %v588_v53  ;;  %v346_v53 = vld [vmem:[%s3165_s11 + $0x2c8] sm:$0xff] }
  0xa1   : > { %2821 = vmatprep.mubr.msk.bf16.mxu1 %vm992_vm0, %v487_v54  ;;  %v353_v54 = vld [vmem:[%s3165_s11 + $0x300] sm:$0xff] }
  0xa2   : > { %v528_v58 = vpack.c.bf16 %v353_v54, %v346_v53  ;;  %v415_v53 = vld [vmem:[%s3165_s11 + $0x4f0] sm:$0xff]  ;;  %v422_v54 = vld [vmem:[%s3165_s11 + $0x528] sm:$0xff] }
  0xa3   : > { %v562_v63 = vpack.c.bf16 %v422_v54, %v415_v53 }
  0xa6   : > { %1396 = vmatmul.mubr.bf16.vlgmr.msra.gmra.mrb[64].mxu0 %v485_v59  ;;  %v431_v59 = vld [vmem:[%s3165_s11 + $0x570] sm:$0xff] }
  0xa7   : > { %1403 = vmatprep.mubr.bf16.mxu0 %v493_v62  ;;  %v571_v62 = vpack.c.bf16 %v438_v60, %v431_v59 }
  0xa8   : > { %2822 = vmatmul.mubr.msk.bf16.vlgmr.msra.gmra.mrb[64].mxu1 %vm992_vm0, %v494_v1  ;;  %v360_v1 = vld [vmem:[%s3165_s11 + $0x338] sm:$0xff] }
  0xa9   : > { %2825 = vmatprep.mubr.msk.bf16.mxu1 %vm992_vm0, %v501_v2  ;;  %v367_v2 = vld [vmem:[%s3165_s11 + $0x370] sm:$0xff] }
  0xaa   : > { %v535_v6 = vpack.c.bf16 %v367_v2, %v360_v1 }
  0xae   : > { %1404 = vmatmul.mubr.bf16.gmra.mrb[68].mxu0 %v492_v7  ;;  %v459_v7 = vld [vmem:[%s3165_s11 + $0x650] sm:$0xff] }
  0xaf   : > { %1411 = vmatprep.mubr.bf16.mxu0 %v500_v10  ;;  %v585_v10 = vpack.c.bf16 %v466_v8, %v459_v7 }
  0xb0   : > { %2826 = vmatmul.mubr.msk.bf16.gmra.mrb[68].mxu1 %vm992_vm0, %v508_v13  ;;  %v374_v13 = vld [vmem:[%s3165_s11 + $0x3a8] sm:$0xff] }
  0xb1   : > { %2829 = vmatprep.mubr.msk.bf16.mxu1 %vm992_vm0, %v515_v14  ;;  %v381_v14 = vld [vmem:[%s3165_s11 + $0x3e0] sm:$0xff] }
  0xb2   : > { %v542_v18 = vpack.c.bf16 %v381_v14, %v374_v13  ;;  %v429_v13 = vld [vmem:[%s3165_s11 + $0x560] sm:$0xff] }
  0xb6   : > { %1412 = vmatmul.mubr.bf16.gmra.mrb[72].mxu0 %v499_v19  ;;  %v592_v19 = vpack.c.bf16 %v480_v17, %v473_v16  ;;  %v436_v16 = vld [vmem:[%s3165_s11 + $0x598] sm:$0xff]  ;;  %v1731_v17 = vld [vmem:[%s3768_s3 + $0x70] sm:$0xff] }
  0xb7   : > { %1419 = vmatprep.mubr.bf16.mxu0 %v507_v22  ;;  %v388_v22 = vld [vmem:[%s3165_s11 + $0x418] sm:$0xff] }
  0xb8   : > { %2830 = vmatmul.mubr.msk.bf16.gmra.mrb[72].mxu1 %vm992_vm0, %v522_v25  ;;  %v549_v25 = vpack.c.bf16 %v395_v23, %v388_v22  ;;  %v451_v22 = vld [vmem:[%s3165_s11 + $0x610] sm:$0xff] }
  0xb9   : > { %2833 = vmatprep.mubr.msk.bf16.mxu1 %vm992_vm0, %v529_v26  ;;  %v1717_v26 = vld [vmem:[%s3768_s3] sm:$0xff]  ;;  %v577_v30 = vpack.c.bf16 %v451_v22, %v444_v21  ;;  %v471_v22 = vld [vmem:[%s3165_s11 + $0x6b0] sm:$0xff] }
  0xba   : > { %v2933_v28 = vpack.c.bf16 %v1718_v27, %v1717_v26  ;;  %v569_v27 = vpack.c.bf16 %v436_v16, %v429_v13 }
  0xbc   : > { %2934 = vmatprep.subr.bf16.mxu1 %v2933_v28 }
  0xbd   : > { %2936 = vmatpush3.bf16.msra.mxu1 %v2933_v28 }
  0xbe   : > { %1420 = vmatmul.mubr.bf16.gmra.mrb[76].mxu0 %v506_v31  ;;  %v1719_v31 = vld [vmem:[%s3768_s3 + $0x10] sm:$0xff] }
  0xbf   : > { %1427 = vmatprep.mubr.bf16.mxu0 %v514_v34  ;;  %v409_v34 = vld [vmem:[%s3165_s11 + $0x4c0] sm:$0xff]  ;;  %v2937_v35 = vpack.c.bf16 %v1720_v32, %v1719_v31 }
  0xc0   : > { %2834 = vmatmul.mubr.msk.bf16.gmra.mrb[76].mxu1 %vm992_vm0, %v536_v37  ;;  %v556_v37 = vpack.c.bf16 %v409_v34, %v402_v33 }
  0xc1   : > { %2837 = vmatprep.mubr.msk.bf16.mxu1 %vm992_vm0, %v543_v38  ;;  %2938 = vmatprep.subr.bf16.mxu1 %v2937_v35  ;;  %v1721_v38 = vld [vmem:[%s3768_s3 + $0x20] sm:$0xff] }
  0xc2   : > { %2940 = vmatpush3.bf16.msra.mxu1 %v2937_v35  ;;  %v2941_v40 = vpack.c.bf16 %v1722_v39, %v1721_v38 }
  0xc4   : > { %2942 = vmatprep.subr.bf16.mxu1 %v2941_v40 }
  0xc6   : > { %1428 = vmatmul.mubr.bf16.gmra.mrb[80].mxu0 %v513_v43  ;;  %2944 = vmatpush3.bf16.msra.mxu1 %v2941_v40  ;;  %v1723_v43 = vld [vmem:[%s3768_s3 + $0x30] sm:$0xff] }
  0xc7   : > { %1435 = vmatprep.mubr.bf16.mxu0 %v521_v46  ;;  %v423_v46 = vld [vmem:[%s3165_s11 + $0x530] sm:$0xff]  ;;  %v2945_v47 = vpack.c.bf16 %v1724_v44, %v1723_v43  ;;  %v458_v44 = vld [vmem:[%s3165_s11 + $0x648] sm:$0xff] }
  0xc8   : > { %2838 = vmatmul.mubr.msk.bf16.gmra.mrb[80].mxu1 %vm992_vm0, %v550_v49  ;;  %v563_v49 = vpack.c.bf16 %v423_v46, %v416_v45  ;;  %v443_v40 = vld [vmem:[%s3165_s11 + $0x5d0] sm:$0xff]  ;;  %v465_v45 = vld [vmem:[%s3165_s11 + $0x680] sm:$0xff] }
  0xc9   : > { %2841 = vmatprep.mubr.msk.bf16.mxu1 %vm992_vm0, %v557_v50  ;;  %2946 = vmatprep.subr.bf16.mxu1 %v2945_v47  ;;  %v1725_v50 = vld [vmem:[%s3768_s3 + $0x40] sm:$0xff] }
  0xca   : > { %2948 = vmatpush3.bf16.msra.mxu1 %v2945_v47  ;;  %v2949_v52 = vpack.c.bf16 %v1726_v51, %v1725_v50 }
  0xcc   : > { %2950 = vmatprep.subr.bf16.mxu1 %v2949_v52 }
  0xce   : > { %1436 = vmatmul.mubr.bf16.gmra.mrb[84].mxu0 %v520_v55  ;;  %2952 = vmatpush3.bf16.msra.mxu1 %v2949_v52  ;;  %v1727_v55 = vld [vmem:[%s3768_s3 + $0x50] sm:$0xff]  ;;  %v584_v52 = vpack.c.bf16 %v465_v45, %v458_v44 }
  0xcf   : > { %1443 = vmatprep.mubr.bf16.mxu0 %v528_v58  ;;  %v437_v58 = vld [vmem:[%s3165_s11 + $0x5a0] sm:$0xff]  ;;  %v2953_v59 = vpack.c.bf16 %v1728_v56, %v1727_v55 }
  0xd0   : > { %2842 = vmatmul.mubr.msk.bf16.gmra.mrb[84].mxu1 %vm992_vm0, %v564_v61  ;;  %v3492_v61 = vld [vmem:[%s3767_s2] ss:$0 sm:$0xff]  ;;  %v570_v2 = vpack.c.bf16 %v437_v58, %v430_v57 }
  0xd1   : > { %2845 = vmatprep.mubr.msk.bf16.mxu1 %vm992_vm0, %v571_v62  ;;  %2954 = vmatprep.subr.bf16.mxu1 %v2953_v59 }
  0xd2   : > { %2956 = vmatpush3.bf16.msra.mxu1 %v2953_v59 }
  0xd6   : > { %1444 = vmatmul.mubr.bf16.gmra.mrb[88].mxu0 %v527_v3  ;;  %v1729_v3 = vld [vmem:[%s3768_s3 + $0x60] sm:$0xff] }
  0xd7   : > { %1451 = vmatprep.mubr.bf16.mxu0 %v535_v6  ;;  %v2957_v7 = vpack.c.bf16 %v1730_v4, %v1729_v3  ;;  %v472_v3 = vld [vmem:[%s3165_s11 + $0x6b8] sm:$0xff]  ;;  %v479_v4 = vld [vmem:[%s3165_s11 + $0x6f0] sm:$0xff] }
  0xd8   : > { %2846 = vmatmul.mubr.msk.bf16.gmra.mrb[88].mxu1 %vm992_vm0, %v578_v9 }
  0xd9   : > { %2849 = vmatprep.mubr.msk.bf16.mxu1 %vm992_vm0, %v585_v10  ;;  %2958 = vmatprep.subr.bf16.mxu1 %v2957_v7 }
  0xda   : > { %2960 = vmatpush3.bf16.msra.mxu1 %v2957_v7 }
  0xde   : > { %1452 = vmatmul.mubr.bf16.gmra.mrb[92].mxu0 %v534_v15 }
  0xdf   : > { %1459 = vmatprep.mubr.bf16.mxu0 %v542_v18  ;;  %v1732_v18 = vld [vmem:[%s3768_s3 + $0x78] sm:$0xff] }
  0xe0   : > { %2850 = vmatmul.mubr.msk.bf16.gmra.mrb[92].mxu1 %vm992_vm0, %v592_v19  ;;  %v2961_v23 = vpack.c.bf16 %v1732_v18, %v1731_v17 }
  0xe2   : > { %2962 = vmatprep.subr.bf16.mxu1 %v2961_v23 }
  0xe3   : > { %2964 = vmatpush3.bf16.msra.mxu1 %v2961_v23  ;;  %v478_v23 = vld [vmem:[%s3165_s11 + $0x6e8] sm:$0xff] }
  0xe6   : > { %1460 = vmatmul.mubr.bf16.gmra.mrb[96].mxu0 %v541_v24 }
  0xe7   : > { %1467 = vmatprep.mubr.bf16.mxu0 %v549_v25 }
  0xee   : > { %1468 = vmatmul.mubr.bf16.gmra.mrb[100].mxu0 %v548_v36 }
  0xef   : > { %1475 = vmatprep.mubr.bf16.mxu0 %v556_v37 }
  0xf6   : > { %1476 = vmatmul.mubr.bf16.gmra.mrb[104].mxu0 %v555_v48 }
  0xf7   : > { %1483 = vmatprep.mubr.bf16.mxu0 %v563_v49  ;;  %v576_v49 = vpack.c.bf16 %v450_v41, %v443_v40 }
  0xf9   : > { %v2434_v60 = vpop.f32.mrb[0].mxu0 }
  0xfa   : > { %v2435_v62 = vpop.f32.mrb[1].mxu0 }
  0xfb   : > { %v2436_v0 = vadd.f32 %v2435_v62, %v2434_v60  ;;  %v2437_v1 = vpop.f32.mrb[2].mxu0  ;;  %v2546_v5 = vpop.f32.mrb[0].mxu1 }
  0xfc   : > { %v2438_v6 = vpop.f32.mrb[3].mxu0  ;;  %v2547_v10 = vpop.f32.mrb[1].mxu1 }
  0xfd   : > { %v1076_v8 = vadd.f32 %v2436_v0, %v3492_v61  ;;  %v2439_v9 = vadd.f32 %v2438_v6, %v2437_v1  ;;  %v2548_v11 = vadd.f32 %v2547_v10, %v2546_v5  ;;  %v2549_v12 = vpop.f32.mrb[2].mxu1  ;;  %v464_v0 = vld [vmem:[%s3165_s11 + $0x678] sm:$0xff] }
  0xfe   : > { %1484 = vmatmul.mubr.bf16.gmra.mrb[108].mxu0 %v562_v63  ;;  %v2550_v15 = vpop.f32.mrb[3].mxu1  ;;  %v457_v63 = vld [vmem:[%s3165_s11 + $0x640] sm:$0xff] }
  0xff   : > { %v1079_v14 = vadd.f32 %v2439_v9, %v3492_v61  ;;  %1491 = vmatprep.mubr.bf16.mxu0 %v570_v2  ;;  %v3510_v19 = vadd.f32 %v2548_v11, %v1076_v8  ;;  %v2551_v20 = vadd.f32 %v2550_v15, %v2549_v12  ;;  %v583_v8 = vpack.c.bf16 %v464_v0, %v457_v63 }
 0x100   : > { %v591_v11 = vpack.c.bf16 %v479_v4, %v472_v3 }
 0x101   : > { %v2440_v24 = vpop.f32.mrb[4].mxu0  ;;  %v3514_v25 = vadd.f32 %v2551_v20, %v1079_v14 }
 0x102   : > { %v2441_v26 = vpop.f32.mrb[5].mxu0 }
 0x103   : > { %v2442_v28 = vadd.f32 %v2441_v26, %v2440_v24  ;;  %v2443_v29 = vpop.f32.mrb[6].mxu0  ;;  %v2552_v31 = vpop.f32.mrb[4].mxu1 }
 0x104   : > { %v2444_v32 = vpop.f32.mrb[7].mxu0  ;;  %v2553_v35 = vpop.f32.mrb[5].mxu1 }
 0x105   : > { %v1084_v33 = vadd.f32 %v2442_v28, %v3492_v61  ;;  %v2445_v34 = vadd.f32 %v2444_v32, %v2443_v29  ;;  %v2554_v36 = vadd.f32 %v2553_v35, %v2552_v31  ;;  %v2555_v37 = vpop.f32.mrb[6].mxu1 }
 0x106   : > { %1492 = vmatmul.mubr.bf16.gmra.mrb[112].mxu0 %v569_v27  ;;  %v2556_v39 = vpop.f32.mrb[7].mxu1 }
 0x107   : > { %v1087_v38 = vadd.f32 %v2445_v34, %v3492_v61  ;;  %1499 = vmatprep.mubr.bf16.mxu0 %v577_v30  ;;  %v3520_v42 = vadd.f32 %v2554_v36, %v1084_v33  ;;  %v2557_v43 = vadd.f32 %v2556_v39, %v2555_v37  ;;  %v590_v30 = vpack.c.bf16 %v478_v23, %v471_v22 }
 0x109   : > { %v2446_v46 = vpop.f32.mrb[8].mxu0  ;;  %v3524_v47 = vadd.f32 %v2557_v43, %v1087_v38 }
 0x10a   : > { %v2447_v48 = vpop.f32.mrb[9].mxu0 }
 0x10b   : > { %v2448_v50 = vadd.f32 %v2447_v48, %v2446_v46  ;;  %v2449_v51 = vpop.f32.mrb[10].mxu0  ;;  %v2558_v53 = vpop.f32.mrb[8].mxu1 }
 0x10c   : > { %v2450_v54 = vpop.f32.mrb[11].mxu0  ;;  %v2559_v57 = vpop.f32.mrb[9].mxu1 }
 0x10d   : > { %v1092_v55 = vadd.f32 %v2448_v50, %v3492_v61  ;;  %v2451_v56 = vadd.f32 %v2450_v54, %v2449_v51  ;;  %v2560_v58 = vadd.f32 %v2559_v57, %v2558_v53  ;;  %v2561_v59 = vpop.f32.mrb[10].mxu1 }
 0x10e   : > { %1500 = vmatmul.mubr.bf16.gmra.mrb[116].mxu0 %v576_v49  ;;  %v2562_v62 = vpop.f32.mrb[11].mxu1 }
 0x10f   : > { %v1095_v60 = vadd.f32 %v2451_v56, %v3492_v61  ;;  %1507 = vmatprep.mubr.bf16.mxu0 %v584_v52  ;;  %v3530_v1 = vadd.f32 %v2560_v58, %v1092_v55  ;;  %v2563_v2 = vadd.f32 %v2562_v62, %v2561_v59 }
 0x111   : > { %v2452_v5 = vpop.f32.mrb[12].mxu0  ;;  %v3534_v6 = vadd.f32 %v2563_v2, %v1095_v60 }
 0x112   : > { %v2453_v7 = vpop.f32.mrb[13].mxu0 }
 0x113   : > { %v2454_v9 = vadd.f32 %v2453_v7, %v2452_v5  ;;  %v2455_v10 = vpop.f32.mrb[14].mxu0  ;;  %v2564_v12 = vpop.f32.mrb[12].mxu1 }
 0x114   : > { %v2456_v13 = vpop.f32.mrb[15].mxu0  ;;  %v2565_v16 = vpop.f32.mrb[13].mxu1 }
 0x115   : > { %v1100_v14 = vadd.f32 %v2454_v9, %v3492_v61  ;;  %v2457_v15 = vadd.f32 %v2456_v13, %v2455_v10  ;;  %v2566_v17 = vadd.f32 %v2565_v16, %v2564_v12  ;;  %v2567_v18 = vpop.f32.mrb[14].mxu1 }
 0x116   : > { %1508 = vmatmul.mubr.bf16.gmra.mrb[120].mxu0 %v583_v8  ;;  %v2568_v21 = vpop.f32.mrb[15].mxu1 }
 0x117   : > { %v1103_v20 = vadd.f32 %v2457_v15, %v3492_v61  ;;  %1515 = vmatprep.mubr.bf16.mxu0 %v591_v11  ;;  %v3540_v24 = vadd.f32 %v2566_v17, %v1100_v14  ;;  %v2569_v26 = vadd.f32 %v2568_v21, %v2567_v18 }
 0x119   : > { %v2458_v27 = vpop.f32.mrb[16].mxu0  ;;  %v3542_v28 = vadd.f32 %v2569_v26, %v1103_v20 }
 0x11a   : > { %v2459_v29 = vpop.f32.mrb[17].mxu0 }
 0x11b   : > { %v2460_v31 = vadd.f32 %v2459_v29, %v2458_v27  ;;  %v2461_v32 = vpop.f32.mrb[18].mxu0  ;;  %v2570_v33 = vpop.f32.mrb[16].mxu1 }
 0x11c   : > { %v2462_v34 = vpop.f32.mrb[19].mxu0  ;;  %v2571_v37 = vpop.f32.mrb[17].mxu1 }
 0x11d   : > { %v1108_v35 = vadd.f32 %v2460_v31, %v3492_v61  ;;  %v2463_v36 = vadd.f32 %v2462_v34, %v2461_v32  ;;  %v2572_v38 = vadd.f32 %v2571_v37, %v2570_v33  ;;  %v2573_v39 = vpop.f32.mrb[18].mxu1 }
 0x11e   : > { %1516 = vmatmul.mubr.bf16.gmra.mrb[124].mxu0 %v590_v30  ;;  %v2574_v41 = vpop.f32.mrb[19].mxu1 }
 0x11f   : > { %v1111_v40 = vadd.f32 %v2463_v36, %v3492_v61  ;;  %v3546_v43 = vadd.f32 %v2572_v38, %v1108_v35  ;;  %v2575_v44 = vadd.f32 %v2574_v41, %v2573_v39 }
 0x121   : > { %v2464_v45 = vpop.f32.mrb[20].mxu0  ;;  %v3548_v46 = vadd.f32 %v2575_v44, %v1111_v40 }
 0x122   : > { %v2465_v48 = vpop.f32.mrb[21].mxu0 }
 0x123   : > { %v2466_v49 = vadd.f32 %v2465_v48, %v2464_v45  ;;  %v2467_v50 = vpop.f32.mrb[22].mxu0  ;;  %v2576_v51 = vpop.f32.mrb[20].mxu1 }
 0x124   : > { %v2468_v52 = vpop.f32.mrb[23].mxu0  ;;  %v2577_v55 = vpop.f32.mrb[21].mxu1 }
 0x125   : > { %v1116_v53 = vadd.f32 %v2466_v49, %v3492_v61  ;;  %v2469_v54 = vadd.f32 %v2468_v52, %v2467_v50  ;;  %v2578_v56 = vadd.f32 %v2577_v55, %v2576_v51  ;;  %v2579_v57 = vpop.f32.mrb[22].mxu1 }
 0x126   : > { %v2580_v59 = vpop.f32.mrb[23].mxu1 }
 0x127   : > { %v1119_v58 = vadd.f32 %v2469_v54, %v3492_v61  ;;  %v3552_v60 = vadd.f32 %v2578_v56, %v1116_v53  ;;  %v2581_v62 = vadd.f32 %v2580_v59, %v2579_v57 }
 0x129   : > { %v2470_v63 = vpop.f32.mrb[24].mxu0  ;;  %v3554_v0 = vadd.f32 %v2581_v62, %v1119_v58 }
 0x12a   : > { %v2471_v2 = vpop.f32.mrb[25].mxu0 }
 0x12b   : > { %v2472_v3 = vadd.f32 %v2471_v2, %v2470_v63  ;;  %v2473_v4 = vpop.f32.mrb[26].mxu0  ;;  %v2582_v5 = vpop.f32.mrb[24].mxu1 }
 0x12c   : > { %v2474_v7 = vpop.f32.mrb[27].mxu0  ;;  %v2583_v10 = vpop.f32.mrb[25].mxu1 }
 0x12d   : > { %v1124_v8 = vadd.f32 %v2472_v3, %v3492_v61  ;;  %v2475_v9 = vadd.f32 %v2474_v7, %v2473_v4  ;;  %v2584_v11 = vadd.f32 %v2583_v10, %v2582_v5  ;;  %v2585_v12 = vpop.f32.mrb[26].mxu1 }
 0x12e   : > { %v2586_v14 = vpop.f32.mrb[27].mxu1 }
 0x12f   : > { %v1127_v13 = vadd.f32 %v2475_v9, %v3492_v61  ;;  %v3558_v15 = vadd.f32 %v2584_v11, %v1124_v8  ;;  %v2587_v16 = vadd.f32 %v2586_v14, %v2585_v12 }
 0x131   : > { %v2476_v17 = vpop.f32.mrb[28].mxu0  ;;  %v3560_v18 = vadd.f32 %v2587_v16, %v1127_v13 }
 0x132   : > { %v2477_v20 = vpop.f32.mrb[29].mxu0 }
 0x133   : > { %v2478_v21 = vadd.f32 %v2477_v20, %v2476_v17  ;;  %v2479_v22 = vpop.f32.mrb[30].mxu0  ;;  %v2588_v23 = vpop.f32.mrb[28].mxu1 }
 0x134   : > { %v2480_v26 = vpop.f32.mrb[31].mxu0  ;;  %v2589_v30 = vpop.f32.mrb[29].mxu1 }
 0x135   : > { %v1132_v27 = vadd.f32 %v2478_v21, %v3492_v61  ;;  %v2481_v29 = vadd.f32 %v2480_v26, %v2479_v22  ;;  %v2590_v31 = vadd.f32 %v2589_v30, %v2588_v23  ;;  %v2591_v32 = vpop.f32.mrb[30].mxu1 }
 0x136   : > { %v2592_v34 = vpop.f32.mrb[31].mxu1 }
 0x137   : > { %v1135_v33 = vadd.f32 %v2481_v29, %v3492_v61  ;;  %v3564_v35 = vadd.f32 %v2590_v31, %v1132_v27  ;;  %v2593_v36 = vadd.f32 %v2592_v34, %v2591_v32 }
 0x139   : > { %v2482_v37 = vpop.f32.mrb[32].mxu0  ;;  %v3566_v38 = vadd.f32 %v2593_v36, %v1135_v33 }
 0x13a   : > { %v2483_v39 = vpop.f32.mrb[33].mxu0 }
 0x13b   : > { %v2484_v40 = vadd.f32 %v2483_v39, %v2482_v37  ;;  %v2485_v41 = vpop.f32.mrb[34].mxu0  ;;  %v2594_v44 = vpop.f32.mrb[32].mxu1 }
 0x13c   : > { %v2486_v45 = vpop.f32.mrb[35].mxu0  ;;  %v2595_v50 = vpop.f32.mrb[33].mxu1 }
 0x13d   : > { %v1140_v48 = vadd.f32 %v2484_v40, %v3492_v61  ;;  %v2487_v49 = vadd.f32 %v2486_v45, %v2485_v41  ;;  %v2596_v51 = vadd.f32 %v2595_v50, %v2594_v44  ;;  %v2597_v52 = vpop.f32.mrb[34].mxu1 }
 0x13e   : > { %v2598_v54 = vpop.f32.mrb[35].mxu1 }
 0x13f   : > { %v1143_v53 = vadd.f32 %v2487_v49, %v3492_v61  ;;  %v3570_v55 = vadd.f32 %v2596_v51, %v1140_v48  ;;  %v2599_v56 = vadd.f32 %v2598_v54, %v2597_v52 }
 0x141   : > { %v2488_v57 = vpop.f32.mrb[36].mxu0  ;;  %v3572_v58 = vadd.f32 %v2599_v56, %v1143_v53 }
 0x142   : > { %v2489_v59 = vpop.f32.mrb[37].mxu0 }
 0x143   : > { %v2490_v62 = vadd.f32 %v2489_v59, %v2488_v57  ;;  %v2491_v63 = vpop.f32.mrb[38].mxu0  ;;  %v2600_v2 = vpop.f32.mrb[36].mxu1 }
 0x144   : > { %v2492_v3 = vpop.f32.mrb[39].mxu0  ;;  %v2601_v7 = vpop.f32.mrb[37].mxu1 }
 0x145   : > { %v1148_v4 = vadd.f32 %v2490_v62, %v3492_v61  ;;  %v2493_v5 = vadd.f32 %v2492_v3, %v2491_v63  ;;  %v2602_v8 = vadd.f32 %v2601_v7, %v2600_v2  ;;  %v2603_v9 = vpop.f32.mrb[38].mxu1 }
 0x146   : > { %v2604_v11 = vpop.f32.mrb[39].mxu1 }
 0x147   : > { %v1151_v10 = vadd.f32 %v2493_v5, %v3492_v61  ;;  %v3576_v12 = vadd.f32 %v2602_v8, %v1148_v4  ;;  %v2605_v13 = vadd.f32 %v2604_v11, %v2603_v9 }
 0x149   : > { %v2494_v14 = vpop.f32.mrb[40].mxu0  ;;  %v3578_v16 = vadd.f32 %v2605_v13, %v1151_v10 }
 0x14a   : > { %v2495_v17 = vpop.f32.mrb[41].mxu0 }
 0x14b   : > { %v2496_v20 = vadd.f32 %v2495_v17, %v2494_v14  ;;  %v2497_v21 = vpop.f32.mrb[42].mxu0  ;;  %v2606_v22 = vpop.f32.mrb[40].mxu1 }
 0x14c   : > { %v2498_v23 = vpop.f32.mrb[43].mxu0  ;;  %v2607_v29 = vpop.f32.mrb[41].mxu1 }
 0x14d   : > { %v1156_v26 = vadd.f32 %v2496_v20, %v3492_v61  ;;  %v2499_v27 = vadd.f32 %v2498_v23, %v2497_v21  ;;  %v2608_v30 = vadd.f32 %v2607_v29, %v2606_v22  ;;  %v2609_v31 = vpop.f32.mrb[42].mxu1 }
 0x14e   : > { %v2610_v33 = vpop.f32.mrb[43].mxu1 }
 0x14f   : > { %v1159_v32 = vadd.f32 %v2499_v27, %v3492_v61  ;;  %v3582_v34 = vadd.f32 %v2608_v30, %v1156_v26  ;;  %v2611_v36 = vadd.f32 %v2610_v33, %v2609_v31 }
 0x151   : > { %v2500_v37 = vpop.f32.mrb[44].mxu0  ;;  %v3584_v39 = vadd.f32 %v2611_v36, %v1159_v32 }
 0x152   : > { %v2501_v40 = vpop.f32.mrb[45].mxu0 }
 0x153   : > { %v2502_v41 = vadd.f32 %v2501_v40, %v2500_v37  ;;  %v2503_v44 = vpop.f32.mrb[46].mxu0  ;;  %v2612_v45 = vpop.f32.mrb[44].mxu1 }
 0x154   : > { %v2504_v48 = vpop.f32.mrb[47].mxu0  ;;  %v2613_v51 = vpop.f32.mrb[45].mxu1 }
 0x155   : > { %v1164_v49 = vadd.f32 %v2502_v41, %v3492_v61  ;;  %v2505_v50 = vadd.f32 %v2504_v48, %v2503_v44  ;;  %v2614_v52 = vadd.f32 %v2613_v51, %v2612_v45  ;;  %v2615_v53 = vpop.f32.mrb[46].mxu1 }
 0x156   : > { %v2616_v56 = vpop.f32.mrb[47].mxu1 }
 0x157   : > { %v1167_v54 = vadd.f32 %v2505_v50, %v3492_v61  ;;  %v3588_v57 = vadd.f32 %v2614_v52, %v1164_v49  ;;  %v2617_v59 = vadd.f32 %v2616_v56, %v2615_v53 }
 0x159   : > { %v2506_v62 = vpop.f32.mrb[48].mxu0  ;;  %v3590_v63 = vadd.f32 %v2617_v59, %v1167_v54 }
 0x15a   : > { %v2507_v2 = vpop.f32.mrb[49].mxu0 }
 0x15b   : > { %v2508_v3 = vadd.f32 %v2507_v2, %v2506_v62  ;;  %v2509_v4 = vpop.f32.mrb[50].mxu0  ;;  %v2618_v5 = vpop.f32.mrb[48].mxu1 }
 0x15c   : > { %v2510_v7 = vpop.f32.mrb[51].mxu0  ;;  %v2619_v10 = vpop.f32.mrb[49].mxu1 }
 0x15d   : > { %v1172_v8 = vadd.f32 %v2508_v3, %v3492_v61  ;;  %v2511_v9 = vadd.f32 %v2510_v7, %v2509_v4  ;;  %v2620_v11 = vadd.f32 %v2619_v10, %v2618_v5  ;;  %v2621_v13 = vpop.f32.mrb[50].mxu1 }
 0x15e   : > { %v2622_v17 = vpop.f32.mrb[51].mxu1 }
 0x15f   : > { %v1175_v14 = vadd.f32 %v2511_v9, %v3492_v61  ;;  %v3594_v20 = vadd.f32 %v2620_v11, %v1172_v8  ;;  %v2623_v21 = vadd.f32 %v2622_v17, %v2621_v13 }
 0x161   : > { %v2512_v22 = vpop.f32.mrb[52].mxu0  ;;  %v3596_v23 = vadd.f32 %v2623_v21, %v1175_v14 }
 0x162   : > { %v2513_v26 = vpop.f32.mrb[53].mxu0 }
 0x163   : > { %v2514_v27 = vadd.f32 %v2513_v26, %v2512_v22  ;;  %v2515_v29 = vpop.f32.mrb[54].mxu0  ;;  %v2624_v30 = vpop.f32.mrb[52].mxu1 }
 0x164   : > { %v2516_v31 = vpop.f32.mrb[55].mxu0  ;;  %v2625_v36 = vpop.f32.mrb[53].mxu1 }
 0x165   : > { %v1180_v32 = vadd.f32 %v2514_v27, %v3492_v61  ;;  %v2517_v33 = vadd.f32 %v2516_v31, %v2515_v29  ;;  %v2626_v37 = vadd.f32 %v2625_v36, %v2624_v30  ;;  %v2627_v40 = vpop.f32.mrb[54].mxu1 }
 0x166   : > { %v2628_v44 = vpop.f32.mrb[55].mxu1 }
 0x167   : > { %v1183_v41 = vadd.f32 %v2517_v33, %v3492_v61  ;;  %v3600_v45 = vadd.f32 %v2626_v37, %v1180_v32  ;;  %v2629_v48 = vadd.f32 %v2628_v44, %v2627_v40 }
 0x169   : > { %v2518_v49 = vpop.f32.mrb[56].mxu0  ;;  %v3602_v50 = vadd.f32 %v2629_v48, %v1183_v41 }
 0x16a   : > { %v2519_v51 = vpop.f32.mrb[57].mxu0 }
 0x16b   : > { %v2520_v52 = vadd.f32 %v2519_v51, %v2518_v49  ;;  %v2521_v53 = vpop.f32.mrb[58].mxu0  ;;  %v2630_v54 = vpop.f32.mrb[56].mxu1 }
 0x16c   : > { %v2522_v56 = vpop.f32.mrb[59].mxu0  ;;  %v2631_v2 = vpop.f32.mrb[57].mxu1 }
 0x16d   : > { %v1188_v59 = vadd.f32 %v2520_v52, %v3492_v61  ;;  %v2523_v62 = vadd.f32 %v2522_v56, %v2521_v53  ;;  %v2632_v3 = vadd.f32 %v2631_v2, %v2630_v54  ;;  %v2633_v4 = vpop.f32.mrb[58].mxu1 }
 0x16e   : > { %v2634_v7 = vpop.f32.mrb[59].mxu1 }
 0x16f   : > { %v1191_v5 = vadd.f32 %v2523_v62, %v3492_v61  ;;  %v3606_v8 = vadd.f32 %v2632_v3, %v1188_v59  ;;  %v2635_v9 = vadd.f32 %v2634_v7, %v2633_v4 }
 0x171   : > { %v2524_v10 = vpop.f32.mrb[60].mxu0  ;;  %v3608_v11 = vadd.f32 %v2635_v9, %v1191_v5 }
 0x172   : > { %v2525_v13 = vpop.f32.mrb[61].mxu0 }
 0x173   : > { %v2526_v14 = vadd.f32 %v2525_v13, %v2524_v10  ;;  %v2527_v17 = vpop.f32.mrb[62].mxu0  ;;  %v2636_v21 = vpop.f32.mrb[60].mxu1 }
 0x174   : > { %v2528_v22 = vpop.f32.mrb[63].mxu0  ;;  %v2637_v29 = vpop.f32.mrb[61].mxu1 }
 0x175   : > { %v1196_v26 = vadd.f32 %v2526_v14, %v3492_v61  ;;  %v2529_v27 = vadd.f32 %v2528_v22, %v2527_v17  ;;  %v2638_v30 = vadd.f32 %v2637_v29, %v2636_v21  ;;  %v2639_v31 = vpop.f32.mrb[62].mxu1 }
 0x176   : > { %v2640_v33 = vpop.f32.mrb[63].mxu1 }
 0x177   : > { %v1199_v32 = vadd.f32 %v2529_v27, %v3492_v61  ;;  %v3612_v36 = vadd.f32 %v2638_v30, %v1196_v26  ;;  %v2641_v37 = vadd.f32 %v2640_v33, %v2639_v31 }
 0x179   : > { %v2658_v40 = vpop.f32.mrb[64].mxu0  ;;  %v3614_v41 = vadd.f32 %v2641_v37, %v1199_v32 }
 0x17a   : > { %v2659_v44 = vpop.f32.mrb[65].mxu0 }
 0x17b   : > { %v2660_v48 = vadd.f32 %v2659_v44, %v2658_v40  ;;  %v2661_v49 = vpop.f32.mrb[66].mxu0  ;;  %v2823_v52 = vpop.f32.mrb[64].mxu1 }
 0x17c   : > { %v2662_v51 = vpop.f32.mrb[67].mxu0  ;;  %v1558_v56 = vpop.f32.mrb[65].mxu1 }
 0x17d   : > { %v2663_v53 = vadd.f32 %v2662_v51, %v2661_v49  ;;  %v1398_v54 = vadd.f32 %v2660_v48, %v3510_v19  ;;  %v2824_v59 = vpop.f32.mrb[66].mxu1 }
 0x17e   : > { %v1561_v2 = vpop.f32.mrb[67].mxu1 }
 0x17f   : > { %v1559_v62 = vadd.f32 %v1558_v56, %v1398_v54  ;;  %v1401_v61 = vadd.f32 %v2663_v53, %v3514_v25 }
 0x181   : > { %v1685_v3 = vmax.f32 %v1559_v62, 0.0  ;;  %v1562_v4 = vadd.f32 %v1561_v2, %v1401_v61  ;;  %v2664_v5 = vpop.f32.mrb[68].mxu0 }
 0x182   : > { %v2665_v7 = vpop.f32.mrb[69].mxu0 }
 0x183   : > { %v1686_v9 = vmax.f32 %v1562_v4, 0.0  ;;  %v2666_v10 = vadd.f32 %v2665_v7, %v2664_v5  ;;  %v2667_v13 = vpop.f32.mrb[70].mxu0  ;;  %2885 = vmatprep.mubr.f32.mxu1 %v1685_v3  ;;  %v2827_v17 = vpop.f32.mrb[68].mxu1 }
 0x184   : > { %v2668_v14 = vpop.f32.mrb[71].mxu0  ;;  %v1574_v19 = vpop.f32.mrb[69].mxu1 }
 0x185   : > { %v1406_v21 = vadd.f32 %v2666_v10, %v3520_v42  ;;  %v2669_v22 = vadd.f32 %v2668_v14, %v2667_v13  ;;  %2886 = vmatmul.mubr.f32.vlgmr.msra.gmra.mrb[96].mxu1 %v1686_v9  ;;  %v2828_v26 = vpop.f32.mrb[70].mxu1 }
 0x186   : > { %v1577_v29 = vpop.f32.mrb[71].mxu1 }
 0x187   : > { %v1409_v27 = vadd.f32 %v2669_v22, %v3524_v47  ;;  %v1567_v25 = vadd.f32 %v2823_v52, %v1406_v21 }
 0x189   : > { %v2670_v30 = vpop.f32.mrb[72].mxu0  ;;  %v1687_v31 = vmax.f32 %v1567_v25, 0.0  ;;  %v1570_v32 = vadd.f32 %v2824_v59, %v1409_v27 }
 0x18a   : > { %v2671_v33 = vpop.f32.mrb[73].mxu0 }
 0x18b   : > { %v2672_v37 = vadd.f32 %v2671_v33, %v2670_v30  ;;  %v2673_v40 = vpop.f32.mrb[74].mxu0  ;;  %2888 = vmatprep.mubr.f32.mxu1 %v1687_v31  ;;  %v1688_v44 = vmax.f32 %v1570_v32, 0.0  ;;  %v2831_v49 = vpop.f32.mrb[72].mxu1 }
 0x18c   : > { %v2674_v48 = vpop.f32.mrb[75].mxu0  ;;  %v1590_v53 = vpop.f32.mrb[73].mxu1 }
 0x18d   : > { %v2675_v51 = vadd.f32 %v2674_v48, %v2673_v40  ;;  %2889 = vmatmul.mubr.f32.gmra.mrb[98].mxu1 %v1688_v44  ;;  %v1414_v42 = vadd.f32 %v2672_v37, %v3530_v1  ;;  %v2832_v54 = vpop.f32.mrb[74].mxu1 }
 0x18e   : > { %v1593_v52 = vpop.f32.mrb[75].mxu1 }
 0x18f   : > { %v1575_v56 = vadd.f32 %v1574_v19, %v1414_v42  ;;  %v1417_v47 = vadd.f32 %v2675_v51, %v3534_v6 }
 0x191   : > { %v1689_v62 = vmax.f32 %v1575_v56, 0.0  ;;  %v1578_v61 = vadd.f32 %v1577_v29, %v1417_v47  ;;  %v2676_v59 = vpop.f32.mrb[76].mxu0 }
 0x192   : > { %v2677_v2 = vpop.f32.mrb[77].mxu0 }
 0x193   : > { %v1690_v3 = vmax.f32 %v1578_v61, 0.0  ;;  %v2678_v4 = vadd.f32 %v2677_v2, %v2676_v59  ;;  %v2679_v5 = vpop.f32.mrb[78].mxu0  ;;  %2891 = vmatprep.mubr.f32.mxu1 %v1689_v62  ;;  %v3622_v9 = vpop.f32.mrb[76].mxu1 }
 0x194   : > { %v2680_v7 = vpop.f32.mrb[79].mxu0  ;;  %v1606_v13 = vpop.f32.mrb[77].mxu1 }
 0x195   : > { %v1422_v10 = vadd.f32 %v2678_v4, %v3540_v24  ;;  %v2681_v1 = vadd.f32 %v2680_v7, %v2679_v5  ;;  %2892 = vmatmul.mubr.f32.gmra.mrb[100].mxu1 %v1690_v3  ;;  %v3625_v14 = vpop.f32.mrb[78].mxu1 }
 0x196   : > { %v1609_v22 = vpop.f32.mrb[79].mxu1 }
 0x197   : > { %v1425_v6 = vadd.f32 %v2681_v1, %v3542_v28  ;;  %v1583_v21 = vadd.f32 %v2827_v17, %v1422_v10 }
 0x199   : > { %v2682_v19 = vpop.f32.mrb[80].mxu0  ;;  %v1691_v27 = vmax.f32 %v1583_v21, 0.0  ;;  %v1586_v25 = vadd.f32 %v2828_v26, %v1425_v6 }
 0x19a   : > { %v2683_v29 = vpop.f32.mrb[81].mxu0 }
 0x19b   : > { %v2684_v30 = vadd.f32 %v2683_v29, %v2682_v19  ;;  %v2685_v31 = vpop.f32.mrb[82].mxu0  ;;  %2894 = vmatprep.mubr.f32.mxu1 %v1691_v27  ;;  %v1692_v32 = vmax.f32 %v1586_v25, 0.0  ;;  %v3628_v37 = vpop.f32.mrb[80].mxu1 }
 0x19c   : > { %v2686_v33 = vpop.f32.mrb[83].mxu0  ;;  %v3631_v44 = vpop.f32.mrb[81].mxu1 }
 0x19d   : > { %v2687_v24 = vadd.f32 %v2686_v33, %v2685_v31  ;;  %2895 = vmatmul.mubr.f32.gmra.mrb[102].mxu1 %v1692_v32  ;;  %v1430_v40 = vadd.f32 %v2684_v30, %v3546_v43  ;;  %v3633_v28 = vpop.f32.mrb[82].mxu1 }
 0x19e   : > { %v3636_v26 = vpop.f32.mrb[83].mxu1 }
 0x19f   : > { %v1591_v17 = vadd.f32 %v1590_v53, %v1430_v40  ;;  %v1433_v48 = vadd.f32 %v2687_v24, %v3548_v46 }
 0x1a1   : > { %v1693_v51 = vmax.f32 %v1591_v17, 0.0  ;;  %v1594_v42 = vadd.f32 %v1593_v52, %v1433_v48  ;;  %v2688_v56 = vpop.f32.mrb[84].mxu0 }
 0x1a2   : > { %v2689_v47 = vpop.f32.mrb[85].mxu0 }
 0x1a3   : > { %v1694_v62 = vmax.f32 %v1594_v42, 0.0  ;;  %v2690_v61 = vadd.f32 %v2689_v47, %v2688_v56  ;;  %v2691_v59 = vpop.f32.mrb[86].mxu0  ;;  %2897 = vmatprep.mubr.f32.mxu1 %v1693_v51  ;;  %v3638_v3 = vpop.f32.mrb[84].mxu1 }
 0x1a4   : > { %v2692_v2 = vpop.f32.mrb[87].mxu0  ;;  %v3641_v53 = vpop.f32.mrb[85].mxu1 }
 0x1a5   : > { %v1438_v43 = vadd.f32 %v2690_v61, %v3552_v60  ;;  %v2693_v4 = vadd.f32 %v2692_v2, %v2691_v59  ;;  %2898 = vmatmul.mubr.f32.gmra.mrb[104].mxu1 %v1694_v62  ;;  %v3643_v46 = vpop.f32.mrb[86].mxu1 }
 0x1a6   : > { %v3646_v7 = vpop.f32.mrb[87].mxu1 }
 0x1a7   : > { %v1441_v5 = vadd.f32 %v2693_v4, %v3554_v0  ;;  %v1599_v52 = vadd.f32 %v2831_v49, %v1438_v43 }
 0x1a9   : > { %v2694_v10 = vpop.f32.mrb[88].mxu0  ;;  %v1695_v1 = vmax.f32 %v1599_v52, 0.0  ;;  %v1602_v6 = vadd.f32 %v2832_v54, %v1441_v5 }
 0x1aa   : > { %v2695_v21 = vpop.f32.mrb[89].mxu0 }
 0x1ab   : > { %v2696_v19 = vadd.f32 %v2695_v21, %v2694_v10  ;;  %v2697_v27 = vpop.f32.mrb[90].mxu0  ;;  %2900 = vmatprep.mubr.f32.mxu1 %v1695_v1  ;;  %v1696_v25 = vmax.f32 %v1602_v6, 0.0  ;;  %v3648_v29 = vpop.f32.mrb[88].mxu1 }
 0x1ac   : > { %v2698_v60 = vpop.f32.mrb[91].mxu0  ;;  %v3651_v32 = vpop.f32.mrb[89].mxu1 }
 0x1ad   : > { %v2699_v30 = vadd.f32 %v2698_v60, %v2697_v27  ;;  %2901 = vmatmul.mubr.f32.gmra.mrb[106].mxu1 %v1696_v25  ;;  %v1446_v31 = vadd.f32 %v2696_v19, %v3558_v15  ;;  %v3653_v0 = vpop.f32.mrb[90].mxu1 }
 0x1ae   : > { %v3656_v54 = vpop.f32.mrb[91].mxu1 }
 0x1af   : > { %v1607_v49 = vadd.f32 %v1606_v13, %v1446_v31  ;;  %v1449_v33 = vadd.f32 %v2699_v30, %v3560_v18 }
 0x1b1   : > { %v1697_v24 = vmax.f32 %v1607_v49, 0.0  ;;  %v1610_v40 = vadd.f32 %v1609_v22, %v1449_v33  ;;  %v2700_v17 = vpop.f32.mrb[92].mxu0 }
 0x1b2   : > { %v2701_v48 = vpop.f32.mrb[93].mxu0 }
 0x1b3   : > { %v1698_v51 = vmax.f32 %v1610_v40, 0.0  ;;  %v2702_v42 = vadd.f32 %v2701_v48, %v2700_v17  ;;  %v2703_v56 = vpop.f32.mrb[94].mxu0  ;;  %2903 = vmatprep.mubr.f32.mxu1 %v1697_v24  ;;  %v3658_v62 = vpop.f32.mrb[92].mxu1 }
 0x1b4   : > { %v2704_v47 = vpop.f32.mrb[95].mxu0  ;;  %v3661_v13 = vpop.f32.mrb[93].mxu1 }
 0x1b5   : > { %v1454_v15 = vadd.f32 %v2702_v42, %v3564_v35  ;;  %v2705_v61 = vadd.f32 %v2704_v47, %v2703_v56  ;;  %2904 = vmatmul.mubr.f32.gmra.mrb[108].mxu1 %v1698_v51  ;;  %v3663_v18 = vpop.f32.mrb[94].mxu1 }
 0x1b6   : > { %v3667_v2 = vpop.f32.mrb[95].mxu1 }
 0x1b7   : > { %v1457_v59 = vadd.f32 %v2705_v61, %v3566_v38  ;;  %v1615_v22 = vadd.f32 %v3622_v9, %v1454_v15 }
 0x1b9   : > { %v2706_v43 = vpop.f32.mrb[96].mxu0  ;;  %v1699_v4 = vmax.f32 %v1615_v22, 0.0  ;;  %v1618_v5 = vadd.f32 %v3625_v14, %v1457_v59 }
 0x1ba   : > { %v2707_v52 = vpop.f32.mrb[97].mxu0 }
 0x1bb   : > { %v2708_v10 = vadd.f32 %v2707_v52, %v2706_v43  ;;  %v2709_v1 = vpop.f32.mrb[98].mxu0  ;;  %2906 = vmatprep.mubr.f32.mxu1 %v1699_v4  ;;  %v1700_v35 = vmax.f32 %v1618_v5, 0.0 }
 0x1bc   : > { %v2710_v6 = vpop.f32.mrb[99].mxu0 }
 0x1bd   : > { %v2711_v21 = vadd.f32 %v2710_v6, %v2709_v1  ;;  %2907 = vmatmul.mubr.f32.gmra.mrb[110].mxu1 %v1700_v35  ;;  %v1462_v19 = vadd.f32 %v2708_v10, %v3570_v55 }
 0x1bf   : > { %v1623_v38 = vadd.f32 %v3631_v44, %v1462_v19  ;;  %v1465_v9 = vadd.f32 %v2711_v21, %v3572_v58 }
 0x1c1   : > { %v1701_v27 = vmax.f32 %v1623_v38, 0.0  ;;  %v1626_v25 = vadd.f32 %v3636_v26, %v1465_v9  ;;  %v2712_v60 = vpop.f32.mrb[100].mxu0 }
 0x1c2   : > { %v2713_v30 = vpop.f32.mrb[101].mxu0 }
 0x1c3   : > { %v1702_v14 = vmax.f32 %v1626_v25, 0.0  ;;  %v2714_v31 = vadd.f32 %v2713_v30, %v2712_v60  ;;  %v2715_v49 = vpop.f32.mrb[102].mxu0  ;;  %2909 = vmatprep.mubr.f32.mxu1 %v1701_v27 }
 0x1c4   : > { %v2716_v33 = vpop.f32.mrb[103].mxu0 }
 0x1c5   : > { %v1470_v24 = vadd.f32 %v2714_v31, %v3576_v12  ;;  %v2717_v40 = vadd.f32 %v2716_v33, %v2715_v49  ;;  %2910 = vmatmul.mubr.f32.gmra.mrb[112].mxu1 %v1702_v14 }
 0x1c7   : > { %v1473_v55 = vadd.f32 %v2717_v40, %v3578_v16  ;;  %v1631_v44 = vadd.f32 %v3628_v37, %v1470_v24 }
 0x1c9   : > { %v2718_v17 = vpop.f32.mrb[104].mxu0  ;;  %v1703_v58 = vmax.f32 %v1631_v44, 0.0  ;;  %v1634_v48 = vadd.f32 %v3633_v28, %v1473_v55 }
 0x1ca   : > { %v2719_v26 = vpop.f32.mrb[105].mxu0 }
 0x1cb   : > { %v2720_v51 = vadd.f32 %v2719_v26, %v2718_v17  ;;  %v2721_v42 = vpop.f32.mrb[106].mxu0  ;;  %2912 = vmatprep.mubr.f32.mxu1 %v1703_v58  ;;  %v1704_v56 = vmax.f32 %v1634_v48, 0.0 }
 0x1cc   : > { %v2722_v47 = vpop.f32.mrb[107].mxu0 }
 0x1cd   : > { %v2723_v15 = vadd.f32 %v2722_v47, %v2721_v42  ;;  %2913 = vmatmul.mubr.f32.gmra.mrb[114].mxu1 %v1704_v56  ;;  %v1478_v12 = vadd.f32 %v2720_v51, %v3582_v34 }
 0x1cf   : > { %v1639_v61 = vadd.f32 %v3641_v53, %v1478_v12  ;;  %v1481_v16 = vadd.f32 %v2723_v15, %v3584_v39 }
 0x1d1   : > { %v1705_v59 = vmax.f32 %v1639_v61, 0.0  ;;  %v1642_v37 = vadd.f32 %v3646_v7, %v1481_v16  ;;  %v2724_v22 = vpop.f32.mrb[108].mxu0 }
 0x1d2   : > { %v2725_v43 = vpop.f32.mrb[109].mxu0 }
 0x1d3   : > { %v1706_v28 = vmax.f32 %v1642_v37, 0.0  ;;  %v2726_v4 = vadd.f32 %v2725_v43, %v2724_v22  ;;  %v2727_v5 = vpop.f32.mrb[110].mxu0  ;;  %2915 = vmatprep.mubr.f32.mxu1 %v1705_v59  ;;  %v3707_v43 = vld [vmem:[%s3769_s4] ss:$0 sm:$0xff] }
 0x1d4   : > { %v2728_v52 = vpop.f32.mrb[111].mxu0 }
 0x1d5   : > { %v1486_v10 = vadd.f32 %v2726_v4, %v3588_v57  ;;  %v2729_v1 = vadd.f32 %v2728_v52, %v2727_v5  ;;  %2916 = vmatmul.mubr.f32.gmra.mrb[116].mxu1 %v1706_v28 }
 0x1d7   : > { %v1489_v34 = vadd.f32 %v2729_v1, %v3590_v63  ;;  %v1647_v53 = vadd.f32 %v3638_v3, %v1486_v10 }
 0x1d9   : > { %v2730_v35 = vpop.f32.mrb[112].mxu0  ;;  %v1707_v39 = vmax.f32 %v1647_v53, 0.0  ;;  %v1650_v6 = vadd.f32 %v3643_v46, %v1489_v34 }
 0x1da   : > { %v2731_v7 = vpop.f32.mrb[113].mxu0 }
 0x1db   : > { %v2732_v21 = vadd.f32 %v2731_v7, %v2730_v35  ;;  %v2733_v19 = vpop.f32.mrb[114].mxu0  ;;  %2918 = vmatprep.mubr.f32.mxu1 %v1707_v39  ;;  %v1708_v38 = vmax.f32 %v1650_v6, 0.0 }
 0x1dc   : > { %v2734_v9 = vpop.f32.mrb[115].mxu0 }
 0x1dd   : > { %v2735_v27 = vadd.f32 %v2734_v9, %v2733_v19  ;;  %2919 = vmatmul.mubr.f32.gmra.mrb[118].mxu1 %v1708_v38  ;;  %v1494_v57 = vadd.f32 %v2732_v21, %v3594_v20 }
 0x1df   : > { %v1655_v25 = vadd.f32 %v3651_v32, %v1494_v57  ;;  %v1497_v63 = vadd.f32 %v2735_v27, %v3596_v23 }
 0x1e1   : > { %v1709_v60 = vmax.f32 %v1655_v25, 0.0  ;;  %v1658_v3 = vadd.f32 %v3656_v54, %v1497_v63  ;;  %v2736_v30 = vpop.f32.mrb[116].mxu0 }
 0x1e2   : > { %v2737_v14 = vpop.f32.mrb[117].mxu0 }
 0x1e3   : > { %v1710_v46 = vmax.f32 %v1658_v3, 0.0  ;;  %v2738_v31 = vadd.f32 %v2737_v14, %v2736_v30  ;;  %v2739_v49 = vpop.f32.mrb[118].mxu0  ;;  %2921 = vmatprep.mubr.f32.mxu1 %v1709_v60 }
 0x1e4   : > { %v2740_v33 = vpop.f32.mrb[119].mxu0 }
 0x1e5   : > { %v1502_v24 = vadd.f32 %v2738_v31, %v3600_v45  ;;  %v2741_v40 = vadd.f32 %v2740_v33, %v2739_v49  ;;  %2922 = vmatmul.mubr.f32.gmra.mrb[120].mxu1 %v1710_v46 }
 0x1e7   : > { %v1505_v20 = vadd.f32 %v2741_v40, %v3602_v50  ;;  %v1663_v32 = vadd.f32 %v3648_v29, %v1502_v24 }
 0x1e9   : > { %v2742_v55 = vpop.f32.mrb[120].mxu0  ;;  %v1711_v23 = vmax.f32 %v1663_v32, 0.0  ;;  %v1666_v44 = vadd.f32 %v3653_v0, %v1505_v20 }
 0x1ea   : > { %v2743_v54 = vpop.f32.mrb[121].mxu0 }
 0x1eb   : > { %v2744_v17 = vadd.f32 %v2743_v54, %v2742_v55  ;;  %v2745_v58 = vpop.f32.mrb[122].mxu0  ;;  %2924 = vmatprep.mubr.f32.mxu1 %v1711_v23  ;;  %v1712_v48 = vmax.f32 %v1666_v44, 0.0 }
 0x1ec   : > { %v2746_v26 = vpop.f32.mrb[123].mxu0 }
 0x1ed   : > { %v2747_v51 = vadd.f32 %v2746_v26, %v2745_v58  ;;  %2925 = vmatmul.mubr.f32.gmra.mrb[122].mxu1 %v1712_v48  ;;  %v1510_v45 = vadd.f32 %v2744_v17, %v3606_v8 }
 0x1ef   : > { %v1671_v42 = vadd.f32 %v3661_v13, %v1510_v45  ;;  %v1513_v50 = vadd.f32 %v2747_v51, %v3608_v11 }
 0x1f1   : > { %v1713_v56 = vmax.f32 %v1671_v42, 0.0  ;;  %v1674_v29 = vadd.f32 %v3667_v2, %v1513_v50  ;;  %v2748_v47 = vpop.f32.mrb[124].mxu0 }
 0x1f2   : > { %v2749_v15 = vpop.f32.mrb[125].mxu0 }
 0x1f3   : > { %v1714_v0 = vmax.f32 %v1674_v29, 0.0  ;;  %v2750_v12 = vadd.f32 %v2749_v15, %v2748_v47  ;;  %v2751_v61 = vpop.f32.mrb[126].mxu0  ;;  %2927 = vmatprep.mubr.f32.mxu1 %v1713_v56 }
 0x1f4   : > { %v2752_v16 = vpop.f32.mrb[127].mxu0 }
 0x1f5   : > { %v1518_v59 = vadd.f32 %v2750_v12, %v3612_v36  ;;  %v2753_v37 = vadd.f32 %v2752_v16, %v2751_v61  ;;  %2928 = vmatmul.mubr.f32.gmra.mrb[124].mxu1 %v1714_v0 }
 0x1f7   : > { %v1521_v8 = vadd.f32 %v2753_v37, %v3614_v41  ;;  %v1679_v11 = vadd.f32 %v3658_v62, %v1518_v59 }
 0x1f9   : > { %v1715_v13 = vmax.f32 %v1679_v11, 0.0  ;;  %v1682_v2 = vadd.f32 %v3663_v18, %v1521_v8 }
 0x1fb   : > { %2930 = vmatprep.mubr.f32.mxu1 %v1715_v13  ;;  %v1716_v22 = vmax.f32 %v1682_v2, 0.0 }
 0x1fd   : > { %2931 = vmatmul.mubr.f32.gmra.mrb[126].mxu1 %v1716_v22 }
 0x258   : > { %v2887_v36 = vpop.f32.mrb[96].mxu1 }
 0x259   : > { %v1812_v28 = vadd.f32 %v2887_v36, %v3707_v43  ;;  %v1806_v41 = vpop.f32.mrb[97].mxu1 }
 0x25a   : > { %v1807_v62 = vadd.f32 %v3707_v43, %v1806_v41 }
 0x25c   : > { %v2326_v18 = vpack.c.bf16 %v1812_v28, %v1807_v62 }
 0x25e   : > { %2327 = vst [vmem:[%s3714_s27] sm:$0xff] %v2326_v18  }
 0x260   : > { %v2890_v4 = vpop.f32.mrb[98].mxu1 }
 0x261   : > { %v1822_v5 = vadd.f32 %v2890_v4, %v3707_v43  ;;  %v1816_v52 = vpop.f32.mrb[99].mxu1 }
 0x262   : > { %v1817_v10 = vadd.f32 %v3707_v43, %v1816_v52 }
 0x264   : > { %v2331_v1 = vpack.c.bf16 %v1822_v5, %v1817_v10 }
 0x266   : > { %2403 = vst [vmem:[%s3714_s27 + $0x8] sm:$0xff] %v2331_v1  }
 0x268   : > { %v2893_v34 = vpop.f32.mrb[100].mxu1 }
 0x269   : > { %v1832_v53 = vadd.f32 %v2893_v34, %v3707_v43  ;;  %v1826_v35 = vpop.f32.mrb[101].mxu1 }
 0x26a   : > { %v1827_v39 = vadd.f32 %v3707_v43, %v1826_v35 }
 0x26c   : > { %v2336_v6 = vpack.c.bf16 %v1832_v53, %v1827_v39 }
 0x26e   : > { %2404 = vst [vmem:[%s3714_s27 + $0x10] sm:$0xff] %v2336_v6  }
 0x270   : > { %v2896_v7 = vpop.f32.mrb[102].mxu1 }
 0x271   : > { %v1842_v21 = vadd.f32 %v2896_v7, %v3707_v43  ;;  %v1836_v19 = vpop.f32.mrb[103].mxu1 }
 0x272   : > { %v1837_v38 = vadd.f32 %v3707_v43, %v1836_v19 }
 0x274   : > { %v2341_v9 = vpack.c.bf16 %v1842_v21, %v1837_v38 }
 0x276   : > { %2405 = vst [vmem:[%s3714_s27 + $0x18] sm:$0xff] %v2341_v9  }
 0x278   : > { %v2899_v27 = vpop.f32.mrb[104].mxu1 }
 0x279   : > { %v1852_v57 = vadd.f32 %v2899_v27, %v3707_v43  ;;  %v1846_v25 = vpop.f32.mrb[105].mxu1 }
 0x27a   : > { %v1847_v63 = vadd.f32 %v3707_v43, %v1846_v25 }
 0x27c   : > { %v2346_v60 = vpack.c.bf16 %v1852_v57, %v1847_v63 }
 0x27e   : > { %2406 = vst [vmem:[%s3714_s27 + $0x20] sm:$0xff] %v2346_v60  }
 0x280   : > { %v2902_v3 = vpop.f32.mrb[106].mxu1 }
 0x281   : > { %v1862_v30 = vadd.f32 %v2902_v3, %v3707_v43  ;;  %v1856_v14 = vpop.f32.mrb[107].mxu1 }
 0x282   : > { %v1857_v46 = vadd.f32 %v3707_v43, %v1856_v14 }
 0x284   : > { %v2351_v31 = vpack.c.bf16 %v1862_v30, %v1857_v46 }
 0x286   : > { %2407 = vst [vmem:[%s3714_s27 + $0x28] sm:$0xff] %v2351_v31  }
 0x288   : > { %v2905_v49 = vpop.f32.mrb[108].mxu1 }
 0x289   : > { %v1872_v33 = vadd.f32 %v2905_v49, %v3707_v43  ;;  %v1866_v24 = vpop.f32.mrb[109].mxu1 }
 0x28a   : > { %v1867_v40 = vadd.f32 %v3707_v43, %v1866_v24 }
 0x28c   : > { %v2356_v20 = vpack.c.bf16 %v1872_v33, %v1867_v40 }
 0x28e   : > { %2408 = vst [vmem:[%s3714_s27 + $0x30] sm:$0xff] %v2356_v20  }
 0x290   : > { %v2908_v32 = vpop.f32.mrb[110].mxu1 }
 0x291   : > { %v1882_v55 = vadd.f32 %v2908_v32, %v3707_v43  ;;  %v1876_v23 = vpop.f32.mrb[111].mxu1 }
 0x292   : > { %v1877_v44 = vadd.f32 %v3707_v43, %v1876_v23 }
 0x294   : > { %v2361_v54 = vpack.c.bf16 %v1882_v55, %v1877_v44 }
 0x296   : > { %2409 = vst [vmem:[%s3714_s27 + $0x38] sm:$0xff] %v2361_v54  }
 0x298   : > { %v2911_v17 = vpop.f32.mrb[112].mxu1 }
 0x299   : > { %v1892_v58 = vadd.f32 %v2911_v17, %v3707_v43  ;;  %v1886_v48 = vpop.f32.mrb[113].mxu1 }
 0x29a   : > { %v1887_v26 = vadd.f32 %v3707_v43, %v1886_v48 }
 0x29c   : > { %v2366_v51 = vpack.c.bf16 %v1892_v58, %v1887_v26 }
 0x29e   : > { %2410 = vst [vmem:[%s3714_s27 + $0x40] sm:$0xff] %v2366_v51  }
 0x2a0   : > { %v2914_v45 = vpop.f32.mrb[114].mxu1 }
 0x2a1   : > { %v1902_v42 = vadd.f32 %v2914_v45, %v3707_v43  ;;  %v1896_v50 = vpop.f32.mrb[115].mxu1 }
 0x2a2   : > { %v1897_v56 = vadd.f32 %v3707_v43, %v1896_v50 }
 0x2a4   : > { %v2371_v29 = vpack.c.bf16 %v1902_v42, %v1897_v56 }
 0x2a6   : > { %2411 = vst [vmem:[%s3714_s27 + $0x48] sm:$0xff] %v2371_v29  }
 0x2a8   : > { %v2917_v47 = vpop.f32.mrb[116].mxu1 }
 0x2a9   : > { %v1912_v15 = vadd.f32 %v2917_v47, %v3707_v43  ;;  %v1906_v0 = vpop.f32.mrb[117].mxu1 }
 0x2aa   : > { %v1907_v12 = vadd.f32 %v3707_v43, %v1906_v0 }
 0x2ac   : > { %v2376_v61 = vpack.c.bf16 %v1912_v15, %v1907_v12 }
 0x2ae   : > { %2412 = vst [vmem:[%s3714_s27 + $0x50] sm:$0xff] %v2376_v61  }
 0x2b0   : > { %v2920_v16 = vpop.f32.mrb[118].mxu1 }
 0x2b1   : > { %v1922_v59 = vadd.f32 %v2920_v16, %v3707_v43  ;;  %v1916_v37 = vpop.f32.mrb[119].mxu1 }
 0x2b2   : > { %v1917_v8 = vadd.f32 %v3707_v43, %v1916_v37 }
 0x2b4   : > { %v2381_v11 = vpack.c.bf16 %v1922_v59, %v1917_v8 }
 0x2b6   : > { %2413 = vst [vmem:[%s3714_s27 + $0x58] sm:$0xff] %v2381_v11  }
 0x2b8   : > { %v2923_v13 = vpop.f32.mrb[120].mxu1 }
 0x2b9   : > { %v1932_v2 = vadd.f32 %v2923_v13, %v3707_v43  ;;  %v1926_v22 = vpop.f32.mrb[121].mxu1 }
 0x2ba   : > { %v1927_v36 = vadd.f32 %v3707_v43, %v1926_v22 }
 0x2bc   : > { %v2386_v28 = vpack.c.bf16 %v1932_v2, %v1927_v36 }
 0x2be   : > { %2414 = vst [vmem:[%s3714_s27 + $0x60] sm:$0xff] %v2386_v28  }
 0x2c0   : > { %v2926_v41 = vpop.f32.mrb[122].mxu1 }
 0x2c1   : > { %v1942_v62 = vadd.f32 %v2926_v41, %v3707_v43  ;;  %v1936_v18 = vpop.f32.mrb[123].mxu1 }
 0x2c2   : > { %v1937_v4 = vadd.f32 %v3707_v43, %v1936_v18 }
 0x2c4   : > { %v2391_v5 = vpack.c.bf16 %v1942_v62, %v1937_v4 }
 0x2c6   : > { %2415 = vst [vmem:[%s3714_s27 + $0x68] sm:$0xff] %v2391_v5  }
 0x2c8   : > { %v2929_v52 = vpop.f32.mrb[124].mxu1 }
 0x2c9   : > { %v1952_v10 = vadd.f32 %v2929_v52, %v3707_v43  ;;  %v1946_v1 = vpop.f32.mrb[125].mxu1 }
 0x2ca   : > { %v1947_v34 = vadd.f32 %v3707_v43, %v1946_v1 }
 0x2cc   : > { %v2396_v53 = vpack.c.bf16 %v1952_v10, %v1947_v34 }
 0x2ce   : > { %2416 = vst [vmem:[%s3714_s27 + $0x70] sm:$0xff] %v2396_v53  }
 0x2d0   : > { %v2932_v35 = vpop.f32.mrb[126].mxu1 }
 0x2d1   : > { %v1962_v39 = vadd.f32 %v2932_v35, %v3707_v43  ;;  %v1956_v6 = vpop.f32.mrb[127].mxu1 }
 0x2d2   : > { %v1957_v7 = vadd.f32 %v3707_v43, %v1956_v6 }
 0x2d4   : > { %v2401_v21 = vpack.c.bf16 %v1962_v39, %v1957_v7 }
 0x2d6   : > { %2417 = vst [vmem:[%s3714_s27 + $0x78] sm:$0xff] %v2401_v21  }
 0x2d7 PF: > { %s15_s18 = sadd.s32 1, %s3029_s18  }
 0x2d8   : > { %p12_p5 = scmp.ge.s32.totalorder %s15_s18, 4  }
 0x2da   :  { %14 = sbr.rel (!%p12_p5) target bundleno = 1 (0x1), region = 70 }

</bundles_post_ra>
